<compile_context>
chip_gen: v6e
topology: v6e:2x2x1
jax: 0.10.0
libtpu: 0.0.40
codegen_flags: <defaults>
</compile_context>

<pallas_src>
import functools

import jax
import jax.numpy as jnp
from jax import lax
from jax.experimental import pallas as pl
from jax.experimental.pallas import tpu as pltpu


def _s2d_kernel(x_ref, o_ref, *, bs, mm_dtype, precision):
    # x_ref: (Ct, H, W)            -- one contiguous channel-tile slab
    # o_ref: (bs*bs, Ct, Ho, Wo)   -- output viewed as (N, bs*bs, C, Ho, Wo)
    Ct, H, W = x_ref.shape
    Ho, Wo = H // bs, W // bs

    # One-hot lane-selection matrices, generated in-kernel (no HBM traffic):
    #   P[bw][w, wo] = 1  iff  w == bs * wo + bw
    w_ids = lax.broadcasted_iota(jnp.int32, (W, Wo), 0)
    wo_ids = lax.broadcasted_iota(jnp.int32, (W, Wo), 1)
    Ps = [(w_ids == bs * wo_ids + bw).astype(mm_dtype) for bw in range(bs)]

    for bh in range(bs):  # static, fully unrolled
        # H de-interleave: strided sublane read of rows h = bs*ho + bh.
        xh = x_ref[:, pl.ds(bh, Ho, stride=bs), :]          # (Ct, Ho, W)
        xh2 = xh.reshape(Ct * Ho, W).astype(mm_dtype)
        for bw in range(bs):  # static, fully unrolled
            # W de-interleave on the MXU:
            #   y[(c, ho), wo] = x[c, bs*ho + bh, bs*wo + bw]
            y = jnp.dot(xh2, Ps[bw],
                        preferred_element_type=jnp.float32,
                        precision=precision)
            o_ref[bh * bs + bw] = y.reshape(Ct, Ho, Wo).astype(o_ref.dtype)


def space_to_depth_pallas(x, block_size: int = 4):
    if block_size != 4:
        raise ValueError("block_size must be 4 (matching the PyTorch module)")
    bs = block_size
    N, C, H, W = x.shape
    if H % bs != 0 or W % bs != 0:
        raise ValueError("H and W must be divisible by the block size")
    if not jnp.issubdtype(x.dtype, jnp.floating):
        # TODO(synk): integer/bool inputs would be silently routed through a
        # float MXU matmul (and v7x has no int MXU path); not supported here.
        raise NotImplementedError("only floating-point inputs are supported")
    Ho, Wo = H // bs, W // bs

    # MXU operand dtype: bf16 stays bf16 (native, exact for a one-hot matmul);
    # everything else goes through f32 with HIGHEST precision (exact).
    if x.dtype == jnp.bfloat16:
        mm_dtype, precision = jnp.bfloat16, None
    else:
        mm_dtype, precision = jnp.float32, lax.Precision.HIGHEST

    # Channel tile: largest divisor of C whose (Ct, H, W) slab stays <= ~8 MiB,
    # keeping the per-step working set (2x in + 2x out + intermediates) well
    # inside v7x's VMEM while still giving large contiguous DMAs.
    itemsize = jnp.dtype(x.dtype).itemsize
    budget = 8 * 1024 * 1024
    Ct = 1
    for cand in range(1, C + 1):
        if C % cand == 0 and cand * H * W * itemsize <= budget:
            Ct = cand

    kernel = functools.partial(_s2d_kernel, bs=bs, mm_dtype=mm_dtype,
                               precision=precision)

    out5 = pl.pallas_call(
        kernel,
        out_shape=jax.ShapeDtypeStruct((N, bs * bs, C, Ho, Wo), x.dtype),
        grid=(N, C // Ct),  # (batch, channel tile) -- both independent
        in_specs=[
            # contiguous (Ct, H, W) slab of x per step
            pl.BlockSpec((None, Ct, H, W), lambda n, ct: (n, ct, 0, 0)),
        ],
        # output viewed as (N, bs*bs, C, Ho, Wo); each step writes all 16
        # (bh, bw) groups for its channel tile.
        out_specs=pl.BlockSpec((None, bs * bs, Ct, Ho, Wo),
                               lambda n, ct: (n, 0, ct, 0, 0)),
        compiler_params=pltpu.CompilerParams(
            dimension_semantics=("parallel", "parallel"),
            vmem_limit_bytes=48 * 1024 * 1024),
    )(x)

    # Free metadata reshape to the module's (N, 16*C, Ho, Wo) layout.
    return out5.reshape(N, C * bs * bs, Ho, Wo)


def space_to_depth_reference(x, bs: int = 4):
    # Pure-JAX reference mirroring the PyTorch forward exactly.
    N, C, H, W = x.shape
    y = x.reshape(N, C, H // bs, bs, W // bs, bs)
    y = jnp.transpose(y, (0, 3, 5, 1, 2, 4))
    return y.reshape(N, C * bs * bs, H // bs, W // bs)


if __name__ == "__main__":
    key = jax.random.PRNGKey(0)
    N, C, H, W = 2, 4, 16, 16

    # float32 path (HIGHEST-precision one-hot matmul -> exact)
    x = jax.random.normal(key, (N, C, H, W), dtype=jnp.float32)
    out = jax.block_until_ready(space_to_depth_pallas(x))
    ref = space_to_depth_reference(x)
    assert out.shape == (N, C * 16, H // 4, W // 4), out.shape
    assert out.dtype == x.dtype
    assert jnp.allclose(out, ref, atol=0.0, rtol=0.0), "f32 mismatch vs reference"

    # bfloat16 path (native bf16 MXU, no f32 upcast -> exact)
    xb = x.astype(jnp.bfloat16)
    outb = jax.block_until_ready(space_to_depth_pallas(xb))
    refb = space_to_depth_reference(xb)
    assert outb.dtype == jnp.bfloat16
    assert jnp.allclose(outb.astype(jnp.float32), refb.astype(jnp.float32),
                        atol=0.0, rtol=0.0), "bf16 mismatch vs reference"

    print("KERNEL_OK")
</pallas_src>

<mosaic_0001>
module attributes {stable_mosaic.version = 11 : i64} {
  func.func @_s2d_kernel(%arg0: i32, %arg1: i32, %arg2: memref<1x4x16x16xf32, #tpu.memory_space<vmem>>, %arg3: memref<1x16x4x4x4xf32, #tpu.memory_space<vmem>>) attributes {dimension_semantics = [#tpu.dimension_semantics<parallel>, #tpu.dimension_semantics<parallel>], iteration_bounds = array<i64: 2, 1>, scalar_prefetch = 0 : i64, scratch_operands = 0 : i64, tpu.core_type = #tpu.core_type<tc>, window_params = [{transform_indices = @transform_0, window_bounds = array<i64: 1, 4, 16, 16>}, {transform_indices = @transform_1, window_bounds = array<i64: 1, 16, 4, 4, 4>}]} {
    %0 = tpu.iota {dimensions = array<i32: 0>} : vector<16x4xi32>
    %1 = tpu.iota {dimensions = array<i32: 1>} : vector<16x4xi32>
    %c4_i32 = arith.constant 4 : i32
    %2 = vector.broadcast %c4_i32 : i32 to vector<16x4xi32>
    %3 = arith.muli %2, %1 : vector<16x4xi32>
    %c0_i32 = arith.constant 0 : i32
    %4 = vector.broadcast %c0_i32 : i32 to vector<16x4xi32>
    %5 = arith.addi %3, %4 : vector<16x4xi32>
    %6 = arith.cmpi eq, %0, %5 : vector<16x4xi32>
    %7 = arith.extui %6 : vector<16x4xi1> to vector<16x4xi32>
    %8 = arith.sitofp %7 : vector<16x4xi32> to vector<16x4xf32>
    %c4_i32_0 = arith.constant 4 : i32
    %9 = vector.broadcast %c4_i32_0 : i32 to vector<16x4xi32>
    %10 = arith.muli %9, %1 : vector<16x4xi32>
    %c1_i32 = arith.constant 1 : i32
    %11 = vector.broadcast %c1_i32 : i32 to vector<16x4xi32>
    %12 = arith.addi %10, %11 : vector<16x4xi32>
    %13 = arith.cmpi eq, %0, %12 : vector<16x4xi32>
    %14 = arith.extui %13 : vector<16x4xi1> to vector<16x4xi32>
    %15 = arith.sitofp %14 : vector<16x4xi32> to vector<16x4xf32>
    %c4_i32_1 = arith.constant 4 : i32
    %16 = vector.broadcast %c4_i32_1 : i32 to vector<16x4xi32>
    %17 = arith.muli %16, %1 : vector<16x4xi32>
    %c2_i32 = arith.constant 2 : i32
    %18 = vector.broadcast %c2_i32 : i32 to vector<16x4xi32>
    %19 = arith.addi %17, %18 : vector<16x4xi32>
    %20 = arith.cmpi eq, %0, %19 : vector<16x4xi32>
    %21 = arith.extui %20 : vector<16x4xi1> to vector<16x4xi32>
    %22 = arith.sitofp %21 : vector<16x4xi32> to vector<16x4xf32>
    %c4_i32_2 = arith.constant 4 : i32
    %23 = vector.broadcast %c4_i32_2 : i32 to vector<16x4xi32>
    %24 = arith.muli %23, %1 : vector<16x4xi32>
    %c3_i32 = arith.constant 3 : i32
    %25 = vector.broadcast %c3_i32 : i32 to vector<16x4xi32>
    %26 = arith.addi %24, %25 : vector<16x4xi32>
    %27 = arith.cmpi eq, %0, %26 : vector<16x4xi32>
    %28 = arith.extui %27 : vector<16x4xi1> to vector<16x4xi32>
    %29 = arith.sitofp %28 : vector<16x4xi32> to vector<16x4xf32>
    %c0 = arith.constant 0 : index
    %c0_3 = arith.constant 0 : index
    %c0_4 = arith.constant 0 : index
    %c0_5 = arith.constant 0 : index
    %30 = tpu.strided_load %arg2[%c0, %c0_3, %c0_4, %c0_5] {strides = array<i32: 1, 1, 4, 1>} : memref<1x4x16x16xf32, #tpu.memory_space<vmem>>, vector<1x4x4x16xf32>
    %31 = vector.shape_cast %30 : vector<1x4x4x16xf32> to vector<4x4x16xf32>
    %32 = vector.shape_cast %31 : vector<4x4x16xf32> to vector<16x16xf32>
    %cst = arith.constant dense<0.000000e+00> : vector<16x4xf32>
    %33 = tpu.matmul %32, %8, %cst {dimension_numbers = #tpu.dot_dimension_numbers<[1], [0], [0], [1], [0, 0, 1, 1], [], []>, precision = #tpu.contract_precision<fp32>} : vector<16x16xf32>, vector<16x4xf32>, vector<16x4xf32> -> vector<16x4xf32>
    %34 = vector.shape_cast %33 : vector<16x4xf32> to vector<4x4x4xf32>
    %c0_6 = arith.constant 0 : index
    %c0_7 = arith.constant 0 : index
    %c0_8 = arith.constant 0 : index
    %c0_9 = arith.constant 0 : index
    %c0_10 = arith.constant 0 : index
    %35 = vector.load %arg3[%c0_6, %c0_7, %c0_8, %c0_9, %c0_10] : memref<1x16x4x4x4xf32, #tpu.memory_space<vmem>>, vector<1x1x4x4x4xf32>
    %36 = vector.shape_cast %35 : vector<1x1x4x4x4xf32> to vector<4x4x4xf32>
    %37 = vector.shape_cast %34 : vector<4x4x4xf32> to vector<1x1x4x4x4xf32>
    tpu.vector_store %arg3[%c0_6, %c0_7, %c0_8, %c0_9, %c0_10], %37 {strides = array<i32>} : memref<1x16x4x4x4xf32, #tpu.memory_space<vmem>>, vector<1x1x4x4x4xf32>,
    %cst_11 = arith.constant dense<0.000000e+00> : vector<16x4xf32>
    %38 = tpu.matmul %32, %15, %cst_11 {dimension_numbers = #tpu.dot_dimension_numbers<[1], [0], [0], [1], [0, 0, 1, 1], [], []>, precision = #tpu.contract_precision<fp32>} : vector<16x16xf32>, vector<16x4xf32>, vector<16x4xf32> -> vector<16x4xf32>
    %39 = vector.shape_cast %38 : vector<16x4xf32> to vector<4x4x4xf32>
    %c0_12 = arith.constant 0 : index
    %c1 = arith.constant 1 : index
    %c0_13 = arith.constant 0 : index
    %c0_14 = arith.constant 0 : index
    %c0_15 = arith.constant 0 : index
    %40 = vector.load %arg3[%c0_12, %c1, %c0_13, %c0_14, %c0_15] : memref<1x16x4x4x4xf32, #tpu.memory_space<vmem>>, vector<1x1x4x4x4xf32>
    %41 = vector.shape_cast %40 : vector<1x1x4x4x4xf32> to vector<4x4x4xf32>
    %42 = vector.shape_cast %39 : vector<4x4x4xf32> to vector<1x1x4x4x4xf32>
    tpu.vector_store %arg3[%c0_12, %c1, %c0_13, %c0_14, %c0_15], %42 {strides = array<i32>} : memref<1x16x4x4x4xf32, #tpu.memory_space<vmem>>, vector<1x1x4x4x4xf32>,
    %cst_16 = arith.constant dense<0.000000e+00> : vector<16x4xf32>
    %43 = tpu.matmul %32, %22, %cst_16 {dimension_numbers = #tpu.dot_dimension_numbers<[1], [0], [0], [1], [0, 0, 1, 1], [], []>, precision = #tpu.contract_precision<fp32>} : vector<16x16xf32>, vector<16x4xf32>, vector<16x4xf32> -> vector<16x4xf32>
    %44 = vector.shape_cast %43 : vector<16x4xf32> to vector<4x4x4xf32>
    %c0_17 = arith.constant 0 : index
    %c2 = arith.constant 2 : index
    %c0_18 = arith.constant 0 : index
    %c0_19 = arith.constant 0 : index
    %c0_20 = arith.constant 0 : index
    %45 = vector.load %arg3[%c0_17, %c2, %c0_18, %c0_19, %c0_20] : memref<1x16x4x4x4xf32, #tpu.memory_space<vmem>>, vector<1x1x4x4x4xf32>
    %46 = vector.shape_cast %45 : vector<1x1x4x4x4xf32> to vector<4x4x4xf32>
    %47 = vector.shape_cast %44 : vector<4x4x4xf32> to vector<1x1x4x4x4xf32>
    tpu.vector_store %arg3[%c0_17, %c2, %c0_18, %c0_19, %c0_20], %47 {strides = array<i32>} : memref<1x16x4x4x4xf32, #tpu.memory_space<vmem>>, vector<1x1x4x4x4xf32>,
    %cst_21 = arith.constant dense<0.000000e+00> : vector<16x4xf32>
    %48 = tpu.matmul %32, %29, %cst_21 {dimension_numbers = #tpu.dot_dimension_numbers<[1], [0], [0], [1], [0, 0, 1, 1], [], []>, precision = #tpu.contract_precision<fp32>} : vector<16x16xf32>, vector<16x4xf32>, vector<16x4xf32> -> vector<16x4xf32>
    %49 = vector.shape_cast %48 : vector<16x4xf32> to vector<4x4x4xf32>
    %c0_22 = arith.constant 0 : index
    %c3 = arith.constant 3 : index
    %c0_23 = arith.constant 0 : index
    %c0_24 = arith.constant 0 : index
    %c0_25 = arith.constant 0 : index
    %50 = vector.load %arg3[%c0_22, %c3, %c0_23, %c0_24, %c0_25] : memref<1x16x4x4x4xf32, #tpu.memory_space<vmem>>, vector<1x1x4x4x4xf32>
    %51 = vector.shape_cast %50 : vector<1x1x4x4x4xf32> to vector<4x4x4xf32>
    %52 = vector.shape_cast %49 : vector<4x4x4xf32> to vector<1x1x4x4x4xf32>
    tpu.vector_store %arg3[%c0_22, %c3, %c0_23, %c0_24, %c0_25], %52 {strides = array<i32>} : memref<1x16x4x4x4xf32, #tpu.memory_space<vmem>>, vector<1x1x4x4x4xf32>,
    %c0_26 = arith.constant 0 : index
    %c0_27 = arith.constant 0 : index
    %c1_28 = arith.constant 1 : index
    %c0_29 = arith.constant 0 : index
    %53 = tpu.strided_load %arg2[%c0_26, %c0_27, %c1_28, %c0_29] {strides = array<i32: 1, 1, 4, 1>} : memref<1x4x16x16xf32, #tpu.memory_space<vmem>>, vector<1x4x4x16xf32>
    %54 = vector.shape_cast %53 : vector<1x4x4x16xf32> to vector<4x4x16xf32>
    %55 = vector.shape_cast %54 : vector<4x4x16xf32> to vector<16x16xf32>
    %cst_30 = arith.constant dense<0.000000e+00> : vector<16x4xf32>
    %56 = tpu.matmul %55, %8, %cst_30 {dimension_numbers = #tpu.dot_dimension_numbers<[1], [0], [0], [1], [0, 0, 1, 1], [], []>, precision = #tpu.contract_precision<fp32>} : vector<16x16xf32>, vector<16x4xf32>, vector<16x4xf32> -> vector<16x4xf32>
    %57 = vector.shape_cast %56 : vector<16x4xf32> to vector<4x4x4xf32>
    %c0_31 = arith.constant 0 : index
    %c4 = arith.constant 4 : index
    %c0_32 = arith.constant 0 : index
    %c0_33 = arith.constant 0 : index
    %c0_34 = arith.constant 0 : index
    %58 = vector.load %arg3[%c0_31, %c4, %c0_32, %c0_33, %c0_34] : memref<1x16x4x4x4xf32, #tpu.memory_space<vmem>>, vector<1x1x4x4x4xf32>
    %59 = vector.shape_cast %58 : vector<1x1x4x4x4xf32> to vector<4x4x4xf32>
    %60 = vector.shape_cast %57 : vector<4x4x4xf32> to vector<1x1x4x4x4xf32>
    tpu.vector_store %arg3[%c0_31, %c4, %c0_32, %c0_33, %c0_34], %60 {strides = array<i32>} : memref<1x16x4x4x4xf32, #tpu.memory_space<vmem>>, vector<1x1x4x4x4xf32>,
    %cst_35 = arith.constant dense<0.000000e+00> : vector<16x4xf32>
    %61 = tpu.matmul %55, %15, %cst_35 {dimension_numbers = #tpu.dot_dimension_numbers<[1], [0], [0], [1], [0, 0, 1, 1], [], []>, precision = #tpu.contract_precision<fp32>} : vector<16x16xf32>, vector<16x4xf32>, vector<16x4xf32> -> vector<16x4xf32>
    %62 = vector.shape_cast %61 : vector<16x4xf32> to vector<4x4x4xf32>
    %c0_36 = arith.constant 0 : index
    %c5 = arith.constant 5 : index
    %c0_37 = arith.constant 0 : index
    %c0_38 = arith.constant 0 : index
    %c0_39 = arith.constant 0 : index
    %63 = vector.load %arg3[%c0_36, %c5, %c0_37, %c0_38, %c0_39] : memref<1x16x4x4x4xf32, #tpu.memory_space<vmem>>, vector<1x1x4x4x4xf32>
    %64 = vector.shape_cast %63 : vector<1x1x4x4x4xf32> to vector<4x4x4xf32>
    %65 = vector.shape_cast %62 : vector<4x4x4xf32> to vector<1x1x4x4x4xf32>
    tpu.vector_store %arg3[%c0_36, %c5, %c0_37, %c0_38, %c0_39], %65 {strides = array<i32>} : memref<1x16x4x4x4xf32, #tpu.memory_space<vmem>>, vector<1x1x4x4x4xf32>,
    %cst_40 = arith.constant dense<0.000000e+00> : vector<16x4xf32>
    %66 = tpu.matmul %55, %22, %cst_40 {dimension_numbers = #tpu.dot_dimension_numbers<[1], [0], [0], [1], [0, 0, 1, 1], [], []>, precision = #tpu.contract_precision<fp32>} : vector<16x16xf32>, vector<16x4xf32>, vector<16x4xf32> -> vector<16x4xf32>
    %67 = vector.shape_cast %66 : vector<16x4xf32> to vector<4x4x4xf32>
    %c0_41 = arith.constant 0 : index
    %c6 = arith.constant 6 : index
    %c0_42 = arith.constant 0 : index
    %c0_43 = arith.constant 0 : index
    %c0_44 = arith.constant 0 : index
    %68 = vector.load %arg3[%c0_41, %c6, %c0_42, %c0_43, %c0_44] : memref<1x16x4x4x4xf32, #tpu.memory_space<vmem>>, vector<1x1x4x4x4xf32>
    %69 = vector.shape_cast %68 : vector<1x1x4x4x4xf32> to vector<4x4x4xf32>
    %70 = vector.shape_cast %67 : vector<4x4x4xf32> to vector<1x1x4x4x4xf32>
    tpu.vector_store %arg3[%c0_41, %c6, %c0_42, %c0_43, %c0_44], %70 {strides = array<i32>} : memref<1x16x4x4x4xf32, #tpu.memory_space<vmem>>, vector<1x1x4x4x4xf32>,
    %cst_45 = arith.constant dense<0.000000e+00> : vector<16x4xf32>
    %71 = tpu.matmul %55, %29, %cst_45 {dimension_numbers = #tpu.dot_dimension_numbers<[1], [0], [0], [1], [0, 0, 1, 1], [], []>, precision = #tpu.contract_precision<fp32>} : vector<16x16xf32>, vector<16x4xf32>, vector<16x4xf32> -> vector<16x4xf32>
    %72 = vector.shape_cast %71 : vector<16x4xf32> to vector<4x4x4xf32>
    %c0_46 = arith.constant 0 : index
    %c7 = arith.constant 7 : index
    %c0_47 = arith.constant 0 : index
    %c0_48 = arith.constant 0 : index
    %c0_49 = arith.constant 0 : index
    %73 = vector.load %arg3[%c0_46, %c7, %c0_47, %c0_48, %c0_49] : memref<1x16x4x4x4xf32, #tpu.memory_space<vmem>>, vector<1x1x4x4x4xf32>
    %74 = vector.shape_cast %73 : vector<1x1x4x4x4xf32> to vector<4x4x4xf32>
    %75 = vector.shape_cast %72 : vector<4x4x4xf32> to vector<1x1x4x4x4xf32>
    tpu.vector_store %arg3[%c0_46, %c7, %c0_47, %c0_48, %c0_49], %75 {strides = array<i32>} : memref<1x16x4x4x4xf32, #tpu.memory_space<vmem>>, vector<1x1x4x4x4xf32>,
    %c0_50 = arith.constant 0 : index
    %c0_51 = arith.constant 0 : index
    %c2_52 = arith.constant 2 : index
    %c0_53 = arith.constant 0 : index
    %76 = tpu.strided_load %arg2[%c0_50, %c0_51, %c2_52, %c0_53] {strides = array<i32: 1, 1, 4, 1>} : memref<1x4x16x16xf32, #tpu.memory_space<vmem>>, vector<1x4x4x16xf32>
    %77 = vector.shape_cast %76 : vector<1x4x4x16xf32> to vector<4x4x16xf32>
    %78 = vector.shape_cast %77 : vector<4x4x16xf32> to vector<16x16xf32>
    %cst_54 = arith.constant dense<0.000000e+00> : vector<16x4xf32>
    %79 = tpu.matmul %78, %8, %cst_54 {dimension_numbers = #tpu.dot_dimension_numbers<[1], [0], [0], [1], [0, 0, 1, 1], [], []>, precision = #tpu.contract_precision<fp32>} : vector<16x16xf32>, vector<16x4xf32>, vector<16x4xf32> -> vector<16x4xf32>
    %80 = vector.shape_cast %79 : vector<16x4xf32> to vector<4x4x4xf32>
    %c0_55 = arith.constant 0 : index
    %c8 = arith.constant 8 : index
    %c0_56 = arith.constant 0 : index
    %c0_57 = arith.constant 0 : index
    %c0_58 = arith.constant 0 : index
    %81 = vector.load %arg3[%c0_55, %c8, %c0_56, %c0_57, %c0_58] : memref<1x16x4x4x4xf32, #tpu.memory_space<vmem>>, vector<1x1x4x4x4xf32>
    %82 = vector.shape_cast %81 : vector<1x1x4x4x4xf32> to vector<4x4x4xf32>
    %83 = vector.shape_cast %80 : vector<4x4x4xf32> to vector<1x1x4x4x4xf32>
    tpu.vector_store %arg3[%c0_55, %c8, %c0_56, %c0_57, %c0_58], %83 {strides = array<i32>} : memref<1x16x4x4x4xf32, #tpu.memory_space<vmem>>, vector<1x1x4x4x4xf32>,
    %cst_59 = arith.constant dense<0.000000e+00> : vector<16x4xf32>
    %84 = tpu.matmul %78, %15, %cst_59 {dimension_numbers = #tpu.dot_dimension_numbers<[1], [0], [0], [1], [0, 0, 1, 1], [], []>, precision = #tpu.contract_precision<fp32>} : vector<16x16xf32>, vector<16x4xf32>, vector<16x4xf32> -> vector<16x4xf32>
    %85 = vector.shape_cast %84 : vector<16x4xf32> to vector<4x4x4xf32>
    %c0_60 = arith.constant 0 : index
    %c9 = arith.constant 9 : index
    %c0_61 = arith.constant 0 : index
    %c0_62 = arith.constant 0 : index
    %c0_63 = arith.constant 0 : index
    %86 = vector.load %arg3[%c0_60, %c9, %c0_61, %c0_62, %c0_63] : memref<1x16x4x4x4xf32, #tpu.memory_space<vmem>>, vector<1x1x4x4x4xf32>
    %87 = vector.shape_cast %86 : vector<1x1x4x4x4xf32> to vector<4x4x4xf32>
    %88 = vector.shape_cast %85 : vector<4x4x4xf32> to vector<1x1x4x4x4xf32>
    tpu.vector_store %arg3[%c0_60, %c9, %c0_61, %c0_62, %c0_63], %88 {strides = array<i32>} : memref<1x16x4x4x4xf32, #tpu.memory_space<vmem>>, vector<1x1x4x4x4xf32>,
    %cst_64 = arith.constant dense<0.000000e+00> : vector<16x4xf32>
    %89 = tpu.matmul %78, %22, %cst_64 {dimension_numbers = #tpu.dot_dimension_numbers<[1], [0], [0], [1], [0, 0, 1, 1], [], []>, precision = #tpu.contract_precision<fp32>} : vector<16x16xf32>, vector<16x4xf32>, vector<16x4xf32> -> vector<16x4xf32>
    %90 = vector.shape_cast %89 : vector<16x4xf32> to vector<4x4x4xf32>
    %c0_65 = arith.constant 0 : index
    %c10 = arith.constant 10 : index
    %c0_66 = arith.constant 0 : index
    %c0_67 = arith.constant 0 : index
    %c0_68 = arith.constant 0 : index
    %91 = vector.load %arg3[%c0_65, %c10, %c0_66, %c0_67, %c0_68] : memref<1x16x4x4x4xf32, #tpu.memory_space<vmem>>, vector<1x1x4x4x4xf32>
    %92 = vector.shape_cast %91 : vector<1x1x4x4x4xf32> to vector<4x4x4xf32>
    %93 = vector.shape_cast %90 : vector<4x4x4xf32> to vector<1x1x4x4x4xf32>
    tpu.vector_store %arg3[%c0_65, %c10, %c0_66, %c0_67, %c0_68], %93 {strides = array<i32>} : memref<1x16x4x4x4xf32, #tpu.memory_space<vmem>>, vector<1x1x4x4x4xf32>,
    %cst_69 = arith.constant dense<0.000000e+00> : vector<16x4xf32>
    %94 = tpu.matmul %78, %29, %cst_69 {dimension_numbers = #tpu.dot_dimension_numbers<[1], [0], [0], [1], [0, 0, 1, 1], [], []>, precision = #tpu.contract_precision<fp32>} : vector<16x16xf32>, vector<16x4xf32>, vector<16x4xf32> -> vector<16x4xf32>
    %95 = vector.shape_cast %94 : vector<16x4xf32> to vector<4x4x4xf32>
    %c0_70 = arith.constant 0 : index
    %c11 = arith.constant 11 : index
    %c0_71 = arith.constant 0 : index
    %c0_72 = arith.constant 0 : index
    %c0_73 = arith.constant 0 : index
    %96 = vector.load %arg3[%c0_70, %c11, %c0_71, %c0_72, %c0_73] : memref<1x16x4x4x4xf32, #tpu.memory_space<vmem>>, vector<1x1x4x4x4xf32>
    %97 = vector.shape_cast %96 : vector<1x1x4x4x4xf32> to vector<4x4x4xf32>
    %98 = vector.shape_cast %95 : vector<4x4x4xf32> to vector<1x1x4x4x4xf32>
    tpu.vector_store %arg3[%c0_70, %c11, %c0_71, %c0_72, %c0_73], %98 {strides = array<i32>} : memref<1x16x4x4x4xf32, #tpu.memory_space<vmem>>, vector<1x1x4x4x4xf32>,
    %c0_74 = arith.constant 0 : index
    %c0_75 = arith.constant 0 : index
    %c3_76 = arith.constant 3 : index
    %c0_77 = arith.constant 0 : index
    %99 = tpu.strided_load %arg2[%c0_74, %c0_75, %c3_76, %c0_77] {strides = array<i32: 1, 1, 4, 1>} : memref<1x4x16x16xf32, #tpu.memory_space<vmem>>, vector<1x4x4x16xf32>
    %100 = vector.shape_cast %99 : vector<1x4x4x16xf32> to vector<4x4x16xf32>
    %101 = vector.shape_cast %100 : vector<4x4x16xf32> to vector<16x16xf32>
    %cst_78 = arith.constant dense<0.000000e+00> : vector<16x4xf32>
    %102 = tpu.matmul %101, %8, %cst_78 {dimension_numbers = #tpu.dot_dimension_numbers<[1], [0], [0], [1], [0, 0, 1, 1], [], []>, precision = #tpu.contract_precision<fp32>} : vector<16x16xf32>, vector<16x4xf32>, vector<16x4xf32> -> vector<16x4xf32>
    %103 = vector.shape_cast %102 : vector<16x4xf32> to vector<4x4x4xf32>
    %c0_79 = arith.constant 0 : index
    %c12 = arith.constant 12 : index
    %c0_80 = arith.constant 0 : index
    %c0_81 = arith.constant 0 : index
    %c0_82 = arith.constant 0 : index
    %104 = vector.load %arg3[%c0_79, %c12, %c0_80, %c0_81, %c0_82] : memref<1x16x4x4x4xf32, #tpu.memory_space<vmem>>, vector<1x1x4x4x4xf32>
    %105 = vector.shape_cast %104 : vector<1x1x4x4x4xf32> to vector<4x4x4xf32>
    %106 = vector.shape_cast %103 : vector<4x4x4xf32> to vector<1x1x4x4x4xf32>
    tpu.vector_store %arg3[%c0_79, %c12, %c0_80, %c0_81, %c0_82], %106 {strides = array<i32>} : memref<1x16x4x4x4xf32, #tpu.memory_space<vmem>>, vector<1x1x4x4x4xf32>,
    %cst_83 = arith.constant dense<0.000000e+00> : vector<16x4xf32>
    %107 = tpu.matmul %101, %15, %cst_83 {dimension_numbers = #tpu.dot_dimension_numbers<[1], [0], [0], [1], [0, 0, 1, 1], [], []>, precision = #tpu.contract_precision<fp32>} : vector<16x16xf32>, vector<16x4xf32>, vector<16x4xf32> -> vector<16x4xf32>
    %108 = vector.shape_cast %107 : vector<16x4xf32> to vector<4x4x4xf32>
    %c0_84 = arith.constant 0 : index
    %c13 = arith.constant 13 : index
    %c0_85 = arith.constant 0 : index
    %c0_86 = arith.constant 0 : index
    %c0_87 = arith.constant 0 : index
    %109 = vector.load %arg3[%c0_84, %c13, %c0_85, %c0_86, %c0_87] : memref<1x16x4x4x4xf32, #tpu.memory_space<vmem>>, vector<1x1x4x4x4xf32>
    %110 = vector.shape_cast %109 : vector<1x1x4x4x4xf32> to vector<4x4x4xf32>
    %111 = vector.shape_cast %108 : vector<4x4x4xf32> to vector<1x1x4x4x4xf32>
    tpu.vector_store %arg3[%c0_84, %c13, %c0_85, %c0_86, %c0_87], %111 {strides = array<i32>} : memref<1x16x4x4x4xf32, #tpu.memory_space<vmem>>, vector<1x1x4x4x4xf32>,
    %cst_88 = arith.constant dense<0.000000e+00> : vector<16x4xf32>
    %112 = tpu.matmul %101, %22, %cst_88 {dimension_numbers = #tpu.dot_dimension_numbers<[1], [0], [0], [1], [0, 0, 1, 1], [], []>, precision = #tpu.contract_precision<fp32>} : vector<16x16xf32>, vector<16x4xf32>, vector<16x4xf32> -> vector<16x4xf32>
    %113 = vector.shape_cast %112 : vector<16x4xf32> to vector<4x4x4xf32>
    %c0_89 = arith.constant 0 : index
    %c14 = arith.constant 14 : index
    %c0_90 = arith.constant 0 : index
    %c0_91 = arith.constant 0 : index
    %c0_92 = arith.constant 0 : index
    %114 = vector.load %arg3[%c0_89, %c14, %c0_90, %c0_91, %c0_92] : memref<1x16x4x4x4xf32, #tpu.memory_space<vmem>>, vector<1x1x4x4x4xf32>
    %115 = vector.shape_cast %114 : vector<1x1x4x4x4xf32> to vector<4x4x4xf32>
    %116 = vector.shape_cast %113 : vector<4x4x4xf32> to vector<1x1x4x4x4xf32>
    tpu.vector_store %arg3[%c0_89, %c14, %c0_90, %c0_91, %c0_92], %116 {strides = array<i32>} : memref<1x16x4x4x4xf32, #tpu.memory_space<vmem>>, vector<1x1x4x4x4xf32>,
    %cst_93 = arith.constant dense<0.000000e+00> : vector<16x4xf32>
    %117 = tpu.matmul %101, %29, %cst_93 {dimension_numbers = #tpu.dot_dimension_numbers<[1], [0], [0], [1], [0, 0, 1, 1], [], []>, precision = #tpu.contract_precision<fp32>} : vector<16x16xf32>, vector<16x4xf32>, vector<16x4xf32> -> vector<16x4xf32>
    %118 = vector.shape_cast %117 : vector<16x4xf32> to vector<4x4x4xf32>
    %c0_94 = arith.constant 0 : index
    %c15 = arith.constant 15 : index
    %c0_95 = arith.constant 0 : index
    %c0_96 = arith.constant 0 : index
    %c0_97 = arith.constant 0 : index
    %119 = vector.load %arg3[%c0_94, %c15, %c0_95, %c0_96, %c0_97] : memref<1x16x4x4x4xf32, #tpu.memory_space<vmem>>, vector<1x1x4x4x4xf32>
    %120 = vector.shape_cast %119 : vector<1x1x4x4x4xf32> to vector<4x4x4xf32>
    %121 = vector.shape_cast %118 : vector<4x4x4xf32> to vector<1x1x4x4x4xf32>
    tpu.vector_store %arg3[%c0_94, %c15, %c0_95, %c0_96, %c0_97], %121 {strides = array<i32>} : memref<1x16x4x4x4xf32, #tpu.memory_space<vmem>>, vector<1x1x4x4x4xf32>,
    return
  }
  func.func @transform_0(%arg0: i32, %arg1: i32) -> (i32, i32, i32, i32) {
    %c0_i32 = arith.constant 0 : i32
    %c0_i32_0 = arith.constant 0 : i32
    %c0_i32_1 = arith.constant 0 : i32
    return %arg0, %arg1, %c0_i32, %c0_i32_0 : i32, i32, i32, i32
  }
  func.func @transform_1(%arg0: i32, %arg1: i32) -> (i32, i32, i32, i32, i32) {
    %c0_i32 = arith.constant 0 : i32
    %c0_i32_0 = arith.constant 0 : i32
    %c0_i32_1 = arith.constant 0 : i32
    %c0_i32_2 = arith.constant 0 : i32
    return %arg0, %c0_i32, %arg1, %c0_i32_0, %c0_i32_1 : i32, i32, i32, i32, i32
  }
}

</mosaic_0001>

<bundles_post_ra>
// kernel: tpu_custom_call.1
= control target key start
LH: loop header
LB: loop body
LE: loop exit
PB: predicated region body
PF: predicated region fallthrough
CT: control target
= control target key end

     0   :  { %6 = vsyncpa [#allocation3], 0  ;;  %s11439_s0 = inlined_call_operand.hbm [shape: f32[2,4,16,16], index: 0, kind: input, shape index: {}]   ;;  %s11440_s1 = inlined_call_operand.vmem [shape: f32[2,16,4,4,4], index: 1, kind: output, shape index: {}]  }
   0x1   :  { %8 = vsyncpa [#allocation3 + $0x1], 0  ;;  %s9978_s6 = smov 0   ;;  %s9980_s7 = smov 0  }
   0x2   :  { %s9982_s8 = smov 0   ;;  %s9984_s9 = smov 0  }
   0x3   :  { %s9986_s10 = smov 0   ;;  %s9988_s11 = smov 0  }
   0x4 LB: > { %s8574_s12 = sadd.s32 4294967295, %s9961_s11   ;;  %s26_s13 = sadd.s32 1, %s9957_s10  ;;  %s9961_s11 = sphi %s9988_s11, %s14_s11   ;;  %s9957_s10 = sphi %s9986_s10, %s11464_s10   ;;  %s9953_s9 = sphi %s9984_s9, %s11463_s9   ;;  %s9949_s8 = sphi %s9982_s8, %s11462_s8   ;;  %s9945_s7 = sphi %s9980_s7, %s11461_s7   ;;  %s9941_s6 = sphi %s9978_s6, %s11460_s6  }
   0x5   : > { %p28_p0 = scmp.ge.s32.totalorder %s26_s13, 2  ;;  %s35_s14 = sadd.s32 1, %s9949_s8 }
   0x6   : > { %p42_p1 = scmp.ne.s32.totalorder %s9949_s8, %s9945_s7  ;;  %p43_p2 = scmp.eq.s32.totalorder %s9961_s11, 0 }
   0x7   : > { %s11466_s13 = smov (%p28_p0, %s26_s13), 0  ;;  %p48_p4 = scmp.ne.s32.totalorder %s9945_s7, %s9941_s6 }
   0x8   : > { %p10014_p3 = por %p43_p2, %p42_p1  ;;  %s30_s16 = ssub.s32 %s9957_s10, %s11466_s13 }
   0x9   : > { %p49_p5 = scmp.eq.s32.totalorder %s8574_s12, 0  ;;  %p33_p6 = scmp.eq.s32.totalorder %s30_s16, 0 }
   0xa   : > { %p9830_p8 = scmp.lt.s32.totalorder %s9961_s11, 2  ;;  %s100_s19 = sand.u32 1, %s9949_s8  }
   0xb   : > { %p10021_p7 = por %p49_p5, %p48_p4  ;;  %s8766_s20 = sshll.u32 %s9957_s10, 10 }
   0xc   : > { %s10027_s18 = scalar_select %p33_p6, %s9949_s8, %s35_s14  }
   0xd   : > { %s8578_s21 = sshll.u32 %s100_s19, 6  ;;  %s113_s24 = scalar_lea.hbm %s11439_s0, %s8766_s20 }
   0xe   : > { %s104_s25 = scalar_lea.vmem [#allocation2], %s8578_s21  ;;  %p10036_p9 = pnand %p9830_p8, %p10014_p3 }
   0xf   : > { %s114_s26 = sshll.u32 %s104_s25, 4  ;;  %s101_s28 = scalar_lea.sflag [#allocation3], %s100_s19  ;;  %s115_s26 = int_to_ptr.vmem [resolvable:$true] %s114_s26 }
  0x10   : > { %p9885_p10 = pneg %p10036_p9  ;;  %s9896_s29 = scalar_lea.vmem %s115_s26, 1024 }
  0x11   : > { %p9897_p11 = scmp.ne.s32.totalorder %s115_s26, %s9896_s29  ;;  %s9963_s30 = smov [#allocation2]  }
  0x12   : > { %s9901_s2 = sshll.u32 %s9963_s30, 4  ;;  %s9902_s2 = int_to_ptr.vmem [resolvable:$false] %s9901_s2 }
  0x13   : > { %p9899_p12 = pnand %p9897_p11, %p9885_p10  ;;  %s9903_s3 = scalar_lea.vmem %s9902_s2, 2048 }
  0x14   : > { %p9904_p0 = scmp.lt.s32.totalorder %s115_s26, %s9902_s2  ;;  %p9905_p1 = scmp.lt.s32.totalorder %s9903_s3, %s9896_s29 }
  0x15   : > { %p9900_p13 = pneg %p9899_p12 }
  0x16   : > { %p9906_p2 = por %p9905_p1, %p9904_p0 }
  0x18   : > { %p9907_p3 = pnand %p9906_p2, %p9900_p13 }
  0x1a   : > { %9910 = shalt.err (!%p9907_p3)
}
  0x1b   : > { %s9964_s4 = smov 128   ;;  %s9965_s5 = smov 8  }
  0x1c   : > { %9829 = dma.hbm_to_vmem [thread:$0]  (!%p10036_p9), %s113_s24, 1024, %s115_s26, %s101_s28, %s9964_s4, %s9964_s4, %s9965_s5  }
  0x1d   : > { %p8581_p4 = scmp.ge.s32.totalorder %s9961_s11, 1  ;;  %p122_p5 = scmp.lt.s32.totalorder %s9961_s11, 3 }
  0x1f   : > { %p123_p6 = pnand %p8581_p4, %p122_p5 }
  0x20   : > { %s128_s6 = sand.u32 (!%p123_p6), 1, %s9945_s7  }
  0x21   : > { %126 = sbr.rel (%p123_p6) target bundleno = 541 (0x21d), region = 24  ;;  %s8582_s12 = sshll.u32 (!%p123_p6), %s128_s6, 6 }
  0x22   : > { %s129_s14 = scalar_lea.sflag (!%p123_p6), [#allocation3], %s128_s6  ;;  %s10047_s15 = scalar_lea.vmem (!%p123_p6), [#allocation2], %s8582_s12 }
  0x26   : > { %9936 = dma.done.wait (%p10021_p7), %s129_s14, 1024  }
  0x27   : > { %9938 = vsyncadd (%p10021_p7), %s129_s14, 4294966272  ;;  %v166_v0 = vlaneseq  ;;  %vm212_vm2 = vcmask 130048   ;;  %v9966_v7 = vmov 1.0   ;;  %v9967_v8 = vmov 0.0   ;;  %p157_p7 = scmp.lt.s32.totalorder %s9953_s9, 1 }
  0x28   : > { %v199_v11 = vld [vmem:[%s10047_s15] ss:$4 sm:$0xf]  ;;  %v8593_v15 = vld [vmem:[%s10047_s15 + $0x10] ss:$4 sm:$0xf] }
  0x29   : > { %v10053_v1 = vshrl.u32 %v166_v0, 7  ;;  %v170_v2 = vand.u32 127, %v166_v0  ;;  %v8594_v16 = vld [vmem:[%s10047_s15 + $0x20] ss:$4 sm:$0xf]  ;;  %v210_v17 = vcombine.low %v199_v11, %v8593_v15  ;;  %s11468_s9 = smov (!%p157_p7, %s9953_s9), 1 }
  0x2a   : > { %v8595_v18 = vld [vmem:[%s10047_s15 + $0x30] ss:$4 sm:$0xf]  ;;  %s8767_s16 = sshll.u32 %s11468_s9, 8  ;;  %vm725_vm9 = vcmask 27648  }
  0x2b   : > { %v10056_v3 = vadd.s32 8, %v10053_v1  ;;  %v10058_v4 = vmul.u32 4, %v170_v2  ;;  %v211_v21 = vcombine.low %v8594_v16, %v8595_v18  ;;  %v213_v22 = vsel %vm212_vm2, %v210_v17, 0  ;;  %v8634_v16 = vld [vmem:[%s10047_s15 + $0x21] ss:$4 sm:$0xf]  ;;  %s11031_s19 = scalar_lea.vmem %s11440_s1, %s8767_s16 }
  0x2c   : > { %v10116_v26 = vand.u32 4294901760, %v213_v22  ;;  %v8635_v17 = vld [vmem:[%s10047_s15 + $0x31] ss:$4 sm:$0xf] }
  0x2d   : > { %vm10062_vm0 = vcmp.eq.s32.totalorder %v10056_v3, %v10058_v4  ;;  %vm10068_vm1 = vcmp.eq.s32.totalorder %v10053_v1, %v10058_v4  ;;  %v178_v12 = vadd.s32 1, %v10058_v4  ;;  %v215_v27 = vsel %vm212_vm2, %v211_v21, 0 }
  0x2e   : > { %9152 = vmatprep.subr.msk.mxu0 %vm10062_vm0, %v9966_v7  ;;  %v8586_v9 = vsel %vm10062_vm0, 1.0, %v9967_v8  ;;  %v8585_v10 = vsel %vm10068_vm1, 1.0, %v9967_v8  ;;  %v10119_v28 = vand.u32 4294901760, %v215_v27  ;;  %v10126_v31 = vsub.f32 %v213_v22, %v10116_v26  ;;  %9163 = vmatprep.mubr.f32.mxu1 %v10116_v26 }
  0x2f   : > { %9153 = vmatpush3.msk.msra.mxu0 %vm10062_vm0, %v9966_v7  ;;  %v10086_v13 = vsub.f32 %v8586_v9, %v8586_v9  ;;  %v10088_v14 = vsub.f32 %v8585_v10, %v8585_v10  ;;  %vm10108_vm3 = vcmp.eq.s32.totalorder %v10056_v3, %v178_v12  ;;  %vm10130_vm4 = vcmp.eq.s32.totalorder %v10053_v1, %v178_v12  ;;  %v8632_v10 = vld [vmem:[%s10047_s15 + $0x1] ss:$4 sm:$0xf]  ;;  %v8633_v12 = vld [vmem:[%s10047_s15 + $0x11] ss:$4 sm:$0xf] }
  0x30   : > { %9154 = vmatprep.subr.msk.mxu0 %vm10068_vm1, %v9966_v7  ;;  %v10135_v33 = vsub.f32 %v215_v27, %v10119_v28  ;;  %v8588_v34 = vsel %vm10108_vm3, 1.0, %v9967_v8  ;;  %v10142_v35 = vand.u32 4294901760, %v10126_v31  ;;  %v8587_v37 = vsel %vm10130_vm4, 1.0, %v9967_v8 }
  0x31   : > { %v10097_v19 = vand.u32 4294901760, %v10086_v13  ;;  %9155 = vmatpush3.msk.msra.mxu0 %vm10068_vm1, %v9966_v7  ;;  %v10103_v20 = vand.u32 4294901760, %v10088_v14  ;;  %v10154_v39 = vsub.f32 %v8588_v34, %v8588_v34  ;;  %v10165_v42 = vsub.f32 %v8587_v37, %v8587_v37 }
  0x32   : > { %9166 = vmatprep.subr.mxu0 %v10086_v13  ;;  %v10146_v36 = vand.u32 4294901760, %v10135_v33  ;;  %v287_v38 = vsub.f32 %v10126_v31, %v10142_v35  ;;  %v185_v47 = vadd.s32 2, %v10058_v4  ;;  %v192_v60 = vadd.s32 3, %v10058_v4 }
  0x33   : > { %v336_v24 = vsub.f32 %v10086_v13, %v10097_v19  ;;  %v343_v25 = vsub.f32 %v10088_v14, %v10103_v20  ;;  %v10178_v44 = vand.u32 4294901760, %v10154_v39  ;;  %v10187_v45 = vand.u32 4294901760, %v10165_v42 }
  0x34   : > { %v297_v40 = vsub.f32 %v10135_v33, %v10146_v36  ;;  %v10159_v41 = vand.u32 4294901760, %v287_v38  ;;  %vm10215_vm5 = vcmp.eq.s32.totalorder %v10056_v3, %v185_v47  ;;  %vm10230_vm6 = vcmp.eq.s32.totalorder %v10053_v1, %v185_v47  ;;  %v8678_v47 = vld [vmem:[%s10047_s15 + $0x22] ss:$4 sm:$0xf] }
  0x35   : > { %v10121_v29 = vand.u32 4294901760, %v336_v24  ;;  %v10123_v30 = vand.u32 4294901760, %v343_v25  ;;  %v849_v46 = vsub.f32 %v10154_v39, %v10178_v44  ;;  %v856_v48 = vsub.f32 %v10165_v42, %v10187_v45 }
  0x36   : > { %v10167_v43 = vand.u32 4294901760, %v297_v40  ;;  %9156 = vmatprep.mubr.f32.mxu0 %v10159_v41  ;;  %v8590_v53 = vsel %vm10215_vm5, 1.0, %v9967_v8  ;;  %v8589_v54 = vsel %vm10230_vm6, 1.0, %v9967_v8  ;;  %vm10310_vm7 = vcmp.eq.s32.totalorder %v10056_v3, %v192_v60 }
  0x37   : > { %9159 = vmatprep.subr.mxu1 %v10121_v29  ;;  %v10212_v49 = vand.u32 4294901760, %v849_v46  ;;  %v10227_v51 = vand.u32 4294901760, %v856_v48  ;;  %v10254_v55 = vsub.f32 %v8590_v53, %v8590_v53  ;;  %v10260_v56 = vsub.f32 %v8589_v54, %v8589_v54  ;;  %v8679_v48 = vld [vmem:[%s10047_s15 + $0x32] ss:$4 sm:$0xf] }
  0x38   : > { %9160 = vmatpush3.msra.mxu1 %v10121_v29  ;;  %9157 = vmatmul.mubr.f32.vlgmr.msra.gmra.mxu0 %v10167_v43  ;;  %vm10325_vm8 = vcmp.eq.s32.totalorder %v10053_v1, %v192_v60  ;;  %v8592_v3 = vsel %vm10310_vm7, 1.0, %v9967_v8  ;;  %v2281_v18 = vcombine.low %v8632_v10, %v8633_v12  ;;  %v2282_v22 = vcombine.low %v8634_v16, %v8635_v17 }
  0x39   : > { %9161 = vmatprep.subr.mxu1 %v10123_v30  ;;  %9167 = vmatpush3.msra.mxu0 %v10086_v13  ;;  %v10269_v57 = vand.u32 4294901760, %v10254_v55  ;;  %v10280_v58 = vand.u32 4294901760, %v10260_v56  ;;  %v8591_v1 = vsel %vm10325_vm8, 1.0, %v9967_v8  ;;  %v10349_v4 = vsub.f32 %v8592_v3, %v8592_v3 }
  0x3a   : > { %9162 = vmatpush3.msra.mxu1 %v10123_v30  ;;  %9170 = vmatprep.mubr.f32.mxu0 %v10126_v31  ;;  %v10355_v9 = vsub.f32 %v8591_v1, %v8591_v1  ;;  %v2283_v25 = vsel %vm212_vm2, %v2281_v18, 0  ;;  %v2285_v34 = vsel %vm212_vm2, %v2282_v22, 0  ;;  %v4352_v54 = vcombine.low %v8678_v47, %v8679_v48  ;;  %v8720_v22 = vld [vmem:[%s10047_s15 + $0x3] ss:$4 sm:$0xf] }
  0x3b   : > { %9164 = vmatmul.mubr.f32.vlgmr.msra.gmra.mxu1 %v10119_v28  ;;  %9173 = vmatprep.subr.msk.mxu1 %vm10062_vm0, %v9966_v7  ;;  %v1362_v59 = vsub.f32 %v10254_v55, %v10269_v57  ;;  %v1369_v61 = vsub.f32 %v10260_v56, %v10280_v58  ;;  %v10364_v8 = vand.u32 4294901760, %v10349_v4  ;;  %v10427_v37 = vand.u32 4294901760, %v2283_v25 }
  0x3c   : > { %9174 = vmatpush3.msk.msra.mxu1 %vm10062_vm0, %v9966_v7  ;;  %9177 = vmatprep.mubr.f32.mxu1 %v10142_v35  ;;  %v10376_v11 = vand.u32 4294901760, %v10355_v9  ;;  %v10435_v38 = vand.u32 4294901760, %v2285_v34  ;;  %v4355_v60 = vsel %vm212_vm2, %v4352_v54, 0 }
  0x3d   : > { %9175 = vmatprep.subr.msk.mxu1 %vm10068_vm1, %v9966_v7  ;;  %9168 = vmatprep.subr.mxu0 %v10088_v14  ;;  %v10307_v62 = vand.u32 4294901760, %v1362_v59  ;;  %v10322_v0 = vand.u32 4294901760, %v1369_v61  ;;  %v1875_v15 = vsub.f32 %v10349_v4, %v10364_v8  ;;  %v10442_v40 = vsub.f32 %v2283_v25, %v10427_v37  ;;  %v8721_v25 = vld [vmem:[%s10047_s15 + $0x13] ss:$4 sm:$0xf] }
  0x3e   : > { %9176 = vmatpush3.msk.msra.mxu1 %vm10068_vm1, %v9966_v7  ;;  %9169 = vmatpush3.msra.mxu0 %v10088_v14  ;;  %v1882_v21 = vsub.f32 %v10355_v9, %v10376_v11  ;;  %v10705_v3 = vand.u32 4294901760, %v4355_v60 }
  0x3f   : > { %9178 = vmatmul.mubr.f32.vlgmr.msra.gmra.mxu1 %v10146_v36  ;;  %9187 = vmatprep.subr.msk.mxu1 %vm10062_vm0, %v9966_v7  ;;  %v10405_v24 = vand.u32 4294901760, %v1875_v15 }
  0x40   : > { %9180 = vmatprep.subr.mxu0 %v10097_v19  ;;  %9171 = vmatmul.mubr.f32.vlgmr.msra.gmra.mxu0 %v10135_v33  ;;  %v10416_v27 = vand.u32 4294901760, %v1882_v21  ;;  %v10721_v10 = vsub.f32 %v4355_v60, %v10705_v3 }
  0x41   : > { %9181 = vmatpush3.msra.mxu0 %v10097_v19  ;;  %9188 = vmatpush3.msk.msra.mxu1 %vm10062_vm0, %v9966_v7 }
  0x42   : > { %9182 = vmatprep.subr.mxu0 %v10103_v20  ;;  %9189 = vmatprep.subr.msk.mxu1 %vm10068_vm1, %v9966_v7  ;;  %v10741_v15 = vand.u32 4294901760, %v10721_v10 }
  0x43   : > { %9183 = vmatpush3.msra.mxu0 %v10103_v20  ;;  %9184 = vmatprep.mubr.f32.mxu0 %v10116_v26 }
  0x44   : > { %9190 = vmatpush3.msk.msra.mxu1 %vm10068_vm1, %v9966_v7  ;;  %9191 = vmatprep.mubr.f32.mxu1 %v10116_v26  ;;  %v4437_v17 = vsub.f32 %v10721_v10, %v10741_v15 }
  0x45   : > { %9194 = vmatprep.subr.msk.mxu0 %vm10108_vm3, %v9966_v7  ;;  %9185 = vmatmul.mubr.f32.vlgmr.msra.gmra.mxu0 %v10119_v28 }
  0x46   : > { %9192 = vmatmul.mubr.f32.vlgmr.msra.gmra.mxu1 %v10119_v28  ;;  %9195 = vmatpush3.msk.msra.mxu0 %vm10108_vm3, %v9966_v7  ;;  %v10779_v21 = vand.u32 4294901760, %v4437_v17 }
  0x47   : > { %9201 = vmatprep.subr.mxu1 %v10212_v49  ;;  %9196 = vmatprep.subr.msk.mxu0 %vm10130_vm4, %v9966_v7 }
  0x48   : > { %9202 = vmatpush3.msra.mxu1 %v10212_v49  ;;  %9197 = vmatpush3.msk.msra.mxu0 %vm10130_vm4, %v9966_v7 }
  0x49   : > { %9203 = vmatprep.subr.mxu1 %v10227_v51  ;;  %9198 = vmatprep.mubr.f32.mxu0 %v10159_v41 }
  0x4a   : > { %9204 = vmatpush3.msra.mxu1 %v10227_v51  ;;  %9205 = vmatprep.mubr.f32.mxu1 %v10116_v26 }
  0x4b   : > { %9208 = vmatprep.subr.mxu0 %v10154_v39  ;;  %9199 = vmatmul.mubr.f32.vlgmr.msra.gmra.mxu0 %v10167_v43 }
  0x4c   : > { %9206 = vmatmul.mubr.f32.vlgmr.msra.gmra.mxu1 %v10119_v28  ;;  %9209 = vmatpush3.msra.mxu0 %v10154_v39 }
  0x4d   : > { %9215 = vmatprep.subr.msk.mxu1 %vm10108_vm3, %v9966_v7  ;;  %9210 = vmatprep.subr.mxu0 %v10165_v42 }
  0x4e   : > { %9216 = vmatpush3.msk.msra.mxu1 %vm10108_vm3, %v9966_v7  ;;  %9211 = vmatpush3.msra.mxu0 %v10165_v42 }
  0x4f   : > { %9217 = vmatprep.subr.msk.mxu1 %vm10130_vm4, %v9966_v7  ;;  %9212 = vmatprep.mubr.f32.mxu0 %v10126_v31 }
  0x50   : > { %9218 = vmatpush3.msk.msra.mxu1 %vm10130_vm4, %v9966_v7  ;;  %9219 = vmatprep.mubr.f32.mxu1 %v10142_v35 }
  0x51   : > { %9222 = vmatprep.subr.mxu0 %v10178_v44  ;;  %9213 = vmatmul.mubr.f32.vlgmr.msra.gmra.mxu0 %v10135_v33 }
  0x52   : > { %9220 = vmatmul.mubr.f32.vlgmr.msra.gmra.mxu1 %v10146_v36  ;;  %9223 = vmatpush3.msra.mxu0 %v10178_v44 }
  0x53   : > { %9229 = vmatprep.subr.msk.mxu1 %vm10108_vm3, %v9966_v7  ;;  %9224 = vmatprep.subr.mxu0 %v10187_v45 }
  0x54   : > { %9230 = vmatpush3.msk.msra.mxu1 %vm10108_vm3, %v9966_v7  ;;  %9225 = vmatpush3.msra.mxu0 %v10187_v45 }
  0x55   : > { %9231 = vmatprep.subr.msk.mxu1 %vm10130_vm4, %v9966_v7  ;;  %9226 = vmatprep.mubr.f32.mxu0 %v10116_v26 }
  0x56   : > { %9232 = vmatpush3.msk.msra.mxu1 %vm10130_vm4, %v9966_v7  ;;  %9233 = vmatprep.mubr.f32.mxu1 %v10116_v26 }
  0x57   : > { %9236 = vmatprep.subr.msk.mxu0 %vm10215_vm5, %v9966_v7  ;;  %9227 = vmatmul.mubr.f32.vlgmr.msra.gmra.mxu0 %v10119_v28 }
  0x58   : > { %9234 = vmatmul.mubr.f32.vlgmr.msra.gmra.mxu1 %v10119_v28  ;;  %9237 = vmatpush3.msk.msra.mxu0 %vm10215_vm5, %v9966_v7 }
  0x59   : > { %9243 = vmatprep.subr.mxu1 %v10307_v62  ;;  %9238 = vmatprep.subr.msk.mxu0 %vm10230_vm6, %v9966_v7 }
  0x5a   : > { %9244 = vmatpush3.msra.mxu1 %v10307_v62  ;;  %9239 = vmatpush3.msk.msra.mxu0 %vm10230_vm6, %v9966_v7 }
  0x5b   : > { %9245 = vmatprep.subr.mxu1 %v10322_v0  ;;  %9240 = vmatprep.mubr.f32.mxu0 %v10159_v41 }
  0x5c   : > { %9246 = vmatpush3.msra.mxu1 %v10322_v0  ;;  %9247 = vmatprep.mubr.f32.mxu1 %v10116_v26 }
  0x5d   : > { %9250 = vmatprep.subr.mxu0 %v10254_v55  ;;  %9241 = vmatmul.mubr.f32.vlgmr.msra.gmra.mxu0 %v10167_v43 }
  0x5e   : > { %9248 = vmatmul.mubr.f32.vlgmr.msra.gmra.mxu1 %v10119_v28  ;;  %9251 = vmatpush3.msra.mxu0 %v10254_v55 }
  0x5f   : > { %9257 = vmatprep.subr.msk.mxu1 %vm10215_vm5, %v9966_v7  ;;  %9252 = vmatprep.subr.mxu0 %v10260_v56 }
  0x60   : > { %9258 = vmatpush3.msk.msra.mxu1 %vm10215_vm5, %v9966_v7  ;;  %9253 = vmatpush3.msra.mxu0 %v10260_v56 }
  0x61   : > { %9259 = vmatprep.subr.msk.mxu1 %vm10230_vm6, %v9966_v7  ;;  %9254 = vmatprep.mubr.f32.mxu0 %v10126_v31 }
  0x62   : > { %9260 = vmatpush3.msk.msra.mxu1 %vm10230_vm6, %v9966_v7  ;;  %9261 = vmatprep.mubr.f32.mxu1 %v10142_v35 }
  0x63   : > { %9264 = vmatprep.subr.mxu0 %v10269_v57  ;;  %9255 = vmatmul.mubr.f32.vlgmr.msra.gmra.mxu0 %v10135_v33 }
  0x64   : > { %9262 = vmatmul.mubr.f32.vlgmr.msra.gmra.mxu1 %v10146_v36  ;;  %9265 = vmatpush3.msra.mxu0 %v10269_v57 }
  0x65   : > { %9271 = vmatprep.subr.msk.mxu1 %vm10215_vm5, %v9966_v7  ;;  %9266 = vmatprep.subr.mxu0 %v10280_v58 }
  0x66   : > { %9272 = vmatpush3.msk.msra.mxu1 %vm10215_vm5, %v9966_v7  ;;  %9267 = vmatpush3.msra.mxu0 %v10280_v58 }
  0x67   : > { %9273 = vmatprep.subr.msk.mxu1 %vm10230_vm6, %v9966_v7  ;;  %9268 = vmatprep.mubr.f32.mxu0 %v10116_v26 }
  0x68   : > { %9274 = vmatpush3.msk.msra.mxu1 %vm10230_vm6, %v9966_v7  ;;  %9275 = vmatprep.mubr.f32.mxu1 %v10116_v26 }
  0x69   : > { %9278 = vmatprep.subr.msk.mxu0 %vm10310_vm7, %v9966_v7  ;;  %9269 = vmatmul.mubr.f32.vlgmr.msra.gmra.mxu0 %v10119_v28 }
  0x6a   : > { %9276 = vmatmul.mubr.f32.vlgmr.msra.gmra.mxu1 %v10119_v28  ;;  %9279 = vmatpush3.msk.msra.mxu0 %vm10310_vm7, %v9966_v7 }
  0x6b   : > { %9285 = vmatprep.subr.mxu1 %v10405_v24  ;;  %9280 = vmatprep.subr.msk.mxu0 %vm10325_vm8, %v9966_v7 }
  0x6c   : > { %9286 = vmatpush3.msra.mxu1 %v10405_v24  ;;  %9281 = vmatpush3.msk.msra.mxu0 %vm10325_vm8, %v9966_v7 }
  0x6d   : > { %9287 = vmatprep.subr.mxu1 %v10416_v27  ;;  %9282 = vmatprep.mubr.f32.mxu0 %v10159_v41  ;;  %v10451_v41 = vsub.f32 %v2285_v34, %v10435_v38  ;;  %v8722_v34 = vld [vmem:[%s10047_s15 + $0x23] ss:$4 sm:$0xf] }
  0x6e   : > { %9288 = vmatpush3.msra.mxu1 %v10416_v27  ;;  %9289 = vmatprep.mubr.f32.mxu1 %v10116_v26 }
  0x6f   : > { %9292 = vmatprep.subr.mxu0 %v10349_v4  ;;  %9283 = vmatmul.mubr.f32.vlgmr.msra.gmra.mxu0 %v10167_v43  ;;  %v10462_v43 = vand.u32 4294901760, %v10442_v40  ;;  %v10471_v46 = vand.u32 4294901760, %v10451_v41 }
  0x70   : > { %9290 = vmatmul.mubr.f32.vlgmr.msra.gmra.mxu1 %v10119_v28  ;;  %9293 = vmatpush3.msra.mxu0 %v10349_v4 }
  0x71   : > { %9299 = vmatprep.subr.msk.mxu1 %vm10310_vm7, %v9966_v7  ;;  %9294 = vmatprep.subr.mxu0 %v10355_v9 }
  0x72   : > { %9300 = vmatpush3.msk.msra.mxu1 %vm10310_vm7, %v9966_v7  ;;  %9295 = vmatpush3.msra.mxu0 %v10355_v9 }
  0x73   : > { %9301 = vmatprep.subr.msk.mxu1 %vm10325_vm8, %v9966_v7  ;;  %9296 = vmatprep.mubr.f32.mxu0 %v10126_v31  ;;  %v2357_v31 = vsub.f32 %v10442_v40, %v10462_v43 }
  0x74   : > { %9302 = vmatpush3.msk.msra.mxu1 %vm10325_vm8, %v9966_v7  ;;  %9303 = vmatprep.mubr.f32.mxu1 %v10142_v35 }
  0x75   : > { %9306 = vmatprep.subr.mxu0 %v10364_v8  ;;  %9297 = vmatmul.mubr.f32.vlgmr.msra.gmra.mxu0 %v10135_v33  ;;  %v2367_v33 = vsub.f32 %v10451_v41, %v10471_v46  ;;  %v10499_v35 = vand.u32 4294901760, %v2357_v31 }
  0x76   : > { %9304 = vmatmul.mubr.f32.vlgmr.msra.gmra.mxu1 %v10146_v36  ;;  %9307 = vmatpush3.msra.mxu0 %v10364_v8  ;;  %v8677_v36 = vld [vmem:[%s10047_s15 + $0x12] ss:$4 sm:$0xf] }
  0x77   : > { %9313 = vmatprep.subr.msk.mxu1 %vm10310_vm7, %v9966_v7  ;;  %9308 = vmatprep.subr.mxu0 %v10376_v11 }
  0x78   : > { %9314 = vmatpush3.msk.msra.mxu1 %vm10310_vm7, %v9966_v7  ;;  %9309 = vmatpush3.msra.mxu0 %v10376_v11 }
  0x79   : > { %9315 = vmatprep.subr.msk.mxu1 %vm10325_vm8, %v9966_v7  ;;  %9310 = vmatprep.mubr.f32.mxu0 %v10116_v26 }
  0x7a   : > { %9316 = vmatpush3.msk.msra.mxu1 %vm10325_vm8, %v9966_v7  ;;  %9317 = vmatprep.mubr.f32.mxu1 %v10116_v26  ;;  %v10509_v26 = vand.u32 4294901760, %v2367_v33 }
  0x7b   : > { %9320 = vmatprep.subr.msk.mxu0 %vm10062_vm0, %v9966_v7  ;;  %9311 = vmatmul.mubr.f32.vlgmr.msra.gmra.mxu0 %v10119_v28 }
  0x7c   : > { %9318 = vmatmul.mubr.f32.vlgmr.msra.gmra.mxu1 %v10119_v28  ;;  %9321 = vmatpush3.msk.msra.mxu0 %vm10062_vm0, %v9966_v7  ;;  %v8676_v28 = vld [vmem:[%s10047_s15 + $0x2] ss:$4 sm:$0xf] }
  0x7d   : > { %9327 = vmatprep.subr.mxu1 %v10121_v29  ;;  %9322 = vmatprep.subr.msk.mxu0 %vm10068_vm1, %v9966_v7  ;;  %v4351_v53 = vcombine.low %v8676_v28, %v8677_v36 }
  0x7e   : > { %9328 = vmatpush3.msra.mxu1 %v10121_v29  ;;  %9323 = vmatpush3.msk.msra.mxu0 %vm10068_vm1, %v9966_v7 }
  0x7f   : > { %9329 = vmatprep.subr.mxu1 %v10123_v30  ;;  %9324 = vmatprep.mubr.f32.mxu0 %v10499_v35  ;;  %v4353_v59 = vsel %vm212_vm2, %v4351_v53, 0 }
  0x80   : > { %9330 = vmatpush3.msra.mxu1 %v10123_v30  ;;  %9331 = vmatprep.mubr.f32.mxu1 %v10427_v37  ;;  %v10697_v61 = vand.u32 4294901760, %v4353_v59 }
  0x81   : > { %9334 = vmatprep.subr.mxu0 %v10086_v13  ;;  %9325 = vmatmul.mubr.f32.vlgmr.msra.gmra.mxu0 %v10509_v26 }
  0x82   : > { %9332 = vmatmul.mubr.f32.vlgmr.msra.gmra.mxu1 %v10435_v38  ;;  %9335 = vmatpush3.msra.mxu0 %v10086_v13  ;;  %v10712_v1 = vsub.f32 %v4353_v59, %v10697_v61 }
  0x83   : > { %9341 = vmatprep.subr.msk.mxu1 %vm10062_vm0, %v9966_v7  ;;  %9336 = vmatprep.subr.mxu0 %v10088_v14 }
  0x84   : > { %9342 = vmatpush3.msk.msra.mxu1 %vm10062_vm0, %v9966_v7  ;;  %9337 = vmatpush3.msra.mxu0 %v10088_v14  ;;  %v10732_v12 = vand.u32 4294901760, %v10712_v1 }
  0x85   : > { %9343 = vmatprep.subr.msk.mxu1 %vm10068_vm1, %v9966_v7  ;;  %9338 = vmatprep.mubr.f32.mxu0 %v10442_v40 }
  0x86   : > { %9344 = vmatpush3.msk.msra.mxu1 %vm10068_vm1, %v9966_v7  ;;  %9345 = vmatprep.mubr.f32.mxu1 %v10462_v43  ;;  %v4427_v16 = vsub.f32 %v10712_v1, %v10732_v12 }
  0x87   : > { %9348 = vmatprep.subr.mxu0 %v10097_v19  ;;  %9339 = vmatmul.mubr.f32.vlgmr.msra.gmra.mxu0 %v10451_v41 }
  0x88   : > { %9346 = vmatmul.mubr.f32.vlgmr.msra.gmra.mxu1 %v10471_v46  ;;  %9349 = vmatpush3.msra.mxu0 %v10097_v19  ;;  %v10769_v18 = vand.u32 4294901760, %v4427_v16 }
  0x89   : > { %9355 = vmatprep.subr.msk.mxu1 %vm10062_vm0, %v9966_v7  ;;  %9350 = vmatprep.subr.mxu0 %v10103_v20 }
  0x8a   : > { %9356 = vmatpush3.msk.msra.mxu1 %vm10062_vm0, %v9966_v7  ;;  %9351 = vmatpush3.msra.mxu0 %v10103_v20 }
  0x8b   : > { %9357 = vmatprep.subr.msk.mxu1 %vm10068_vm1, %v9966_v7  ;;  %9352 = vmatprep.mubr.f32.mxu0 %v10427_v37 }
  0x8c   : > { %9358 = vmatpush3.msk.msra.mxu1 %vm10068_vm1, %v9966_v7  ;;  %9359 = vmatprep.mubr.f32.mxu1 %v10427_v37 }
  0x8d   : > { %9362 = vmatprep.subr.msk.mxu0 %vm10108_vm3, %v9966_v7  ;;  %9353 = vmatmul.mubr.f32.vlgmr.msra.gmra.mxu0 %v10435_v38 }
  0x8e   : > { %9360 = vmatmul.mubr.f32.vlgmr.msra.gmra.mxu1 %v10435_v38  ;;  %9363 = vmatpush3.msk.msra.mxu0 %vm10108_vm3, %v9966_v7 }
  0x8f   : > { %9369 = vmatprep.subr.mxu1 %v10212_v49  ;;  %9364 = vmatprep.subr.msk.mxu0 %vm10130_vm4, %v9966_v7 }
  0x90   : > { %9370 = vmatpush3.msra.mxu1 %v10212_v49  ;;  %9365 = vmatpush3.msk.msra.mxu0 %vm10130_vm4, %v9966_v7 }
  0x91   : > { %9371 = vmatprep.subr.mxu1 %v10227_v51  ;;  %9366 = vmatprep.mubr.f32.mxu0 %v10499_v35 }
  0x92   : > { %9372 = vmatpush3.msra.mxu1 %v10227_v51  ;;  %9373 = vmatprep.mubr.f32.mxu1 %v10427_v37 }
  0x93   : > { %9376 = vmatprep.subr.mxu0 %v10154_v39  ;;  %9367 = vmatmul.mubr.f32.vlgmr.msra.gmra.mxu0 %v10509_v26 }
  0x94   : > { %9374 = vmatmul.mubr.f32.vlgmr.msra.gmra.mxu1 %v10435_v38  ;;  %9377 = vmatpush3.msra.mxu0 %v10154_v39 }
  0x95   : > { %9383 = vmatprep.subr.msk.mxu1 %vm10108_vm3, %v9966_v7  ;;  %9378 = vmatprep.subr.mxu0 %v10165_v42 }
  0x96   : > { %9384 = vmatpush3.msk.msra.mxu1 %vm10108_vm3, %v9966_v7  ;;  %9379 = vmatpush3.msra.mxu0 %v10165_v42 }
  0x97   : > { %9385 = vmatprep.subr.msk.mxu1 %vm10130_vm4, %v9966_v7  ;;  %9380 = vmatprep.mubr.f32.mxu0 %v10442_v40 }
  0x98   : > { %9386 = vmatpush3.msk.msra.mxu1 %vm10130_vm4, %v9966_v7  ;;  %9387 = vmatprep.mubr.f32.mxu1 %v10462_v43 }
  0x99   : > { %9390 = vmatprep.subr.mxu0 %v10178_v44  ;;  %9381 = vmatmul.mubr.f32.vlgmr.msra.gmra.mxu0 %v10451_v41 }
  0x9a   : > { %9388 = vmatmul.mubr.f32.vlgmr.msra.gmra.mxu1 %v10471_v46  ;;  %9391 = vmatpush3.msra.mxu0 %v10178_v44 }
  0x9b   : > { %9397 = vmatprep.subr.msk.mxu1 %vm10108_vm3, %v9966_v7  ;;  %9392 = vmatprep.subr.mxu0 %v10187_v45 }
  0x9c   : > { %9398 = vmatpush3.msk.msra.mxu1 %vm10108_vm3, %v9966_v7  ;;  %9393 = vmatpush3.msra.mxu0 %v10187_v45 }
  0x9d   : > { %9399 = vmatprep.subr.msk.mxu1 %vm10130_vm4, %v9966_v7  ;;  %9394 = vmatprep.mubr.f32.mxu0 %v10427_v37 }
  0x9e   : > { %9400 = vmatpush3.msk.msra.mxu1 %vm10130_vm4, %v9966_v7  ;;  %9401 = vmatprep.mubr.f32.mxu1 %v10427_v37 }
  0x9f   : > { %9404 = vmatprep.subr.msk.mxu0 %vm10215_vm5, %v9966_v7  ;;  %9395 = vmatmul.mubr.f32.vlgmr.msra.gmra.mxu0 %v10435_v38 }
  0xa0   : > { %9402 = vmatmul.mubr.f32.vlgmr.msra.gmra.mxu1 %v10435_v38  ;;  %9405 = vmatpush3.msk.msra.mxu0 %vm10215_vm5, %v9966_v7 }
  0xa1   : > { %9411 = vmatprep.subr.mxu1 %v10307_v62  ;;  %9406 = vmatprep.subr.msk.mxu0 %vm10230_vm6, %v9966_v7 }
  0xa2   : > { %9412 = vmatpush3.msra.mxu1 %v10307_v62  ;;  %9407 = vmatpush3.msk.msra.mxu0 %vm10230_vm6, %v9966_v7 }
  0xa3   : > { %9413 = vmatprep.subr.mxu1 %v10322_v0  ;;  %9408 = vmatprep.mubr.f32.mxu0 %v10499_v35 }
  0xa4   : > { %9414 = vmatpush3.msra.mxu1 %v10322_v0  ;;  %9415 = vmatprep.mubr.f32.mxu1 %v10427_v37 }
  0xa5   : > { %9418 = vmatprep.subr.mxu0 %v10254_v55  ;;  %9409 = vmatmul.mubr.f32.vlgmr.msra.gmra.mxu0 %v10509_v26 }
  0xa6   : > { %9416 = vmatmul.mubr.f32.vlgmr.msra.gmra.mxu1 %v10435_v38  ;;  %9419 = vmatpush3.msra.mxu0 %v10254_v55 }
  0xa7   : > { %9425 = vmatprep.subr.msk.mxu1 %vm10215_vm5, %v9966_v7  ;;  %9420 = vmatprep.subr.mxu0 %v10260_v56 }
  0xa8   : > { %9426 = vmatpush3.msk.msra.mxu1 %vm10215_vm5, %v9966_v7  ;;  %9421 = vmatpush3.msra.mxu0 %v10260_v56 }
  0xa9   : > { %9427 = vmatprep.subr.msk.mxu1 %vm10230_vm6, %v9966_v7  ;;  %9422 = vmatprep.mubr.f32.mxu0 %v10442_v40 }
  0xaa   : > { %9428 = vmatpush3.msk.msra.mxu1 %vm10230_vm6, %v9966_v7  ;;  %9429 = vmatprep.mubr.f32.mxu1 %v10462_v43 }
  0xab   : > { %9432 = vmatprep.subr.mxu0 %v10269_v57  ;;  %9423 = vmatmul.mubr.f32.vlgmr.msra.gmra.mxu0 %v10451_v41 }
  0xac   : > { %9430 = vmatmul.mubr.f32.vlgmr.msra.gmra.mxu1 %v10471_v46  ;;  %9433 = vmatpush3.msra.mxu0 %v10269_v57 }
  0xad   : > { %9439 = vmatprep.subr.msk.mxu1 %vm10215_vm5, %v9966_v7  ;;  %9434 = vmatprep.subr.mxu0 %v10280_v58 }
  0xae   : > { %9440 = vmatpush3.msk.msra.mxu1 %vm10215_vm5, %v9966_v7  ;;  %9435 = vmatpush3.msra.mxu0 %v10280_v58 }
  0xaf   : > { %9441 = vmatprep.subr.msk.mxu1 %vm10230_vm6, %v9966_v7  ;;  %9436 = vmatprep.mubr.f32.mxu0 %v10427_v37 }
  0xb0   : > { %9442 = vmatpush3.msk.msra.mxu1 %vm10230_vm6, %v9966_v7  ;;  %9443 = vmatprep.mubr.f32.mxu1 %v10427_v37 }
  0xb1   : > { %9446 = vmatprep.subr.msk.mxu0 %vm10310_vm7, %v9966_v7  ;;  %9437 = vmatmul.mubr.f32.vlgmr.msra.gmra.mxu0 %v10435_v38 }
  0xb2   : > { %9444 = vmatmul.mubr.f32.vlgmr.msra.gmra.mxu1 %v10435_v38  ;;  %9447 = vmatpush3.msk.msra.mxu0 %vm10310_vm7, %v9966_v7 }
  0xb3   : > { %9453 = vmatprep.subr.mxu1 %v10405_v24  ;;  %9448 = vmatprep.subr.msk.mxu0 %vm10325_vm8, %v9966_v7 }
  0xb4   : > { %9454 = vmatpush3.msra.mxu1 %v10405_v24  ;;  %9449 = vmatpush3.msk.msra.mxu0 %vm10325_vm8, %v9966_v7 }
  0xb5   : > { %9455 = vmatprep.subr.mxu1 %v10416_v27  ;;  %9450 = vmatprep.mubr.f32.mxu0 %v10499_v35 }
  0xb6   : > { %9456 = vmatpush3.msra.mxu1 %v10416_v27  ;;  %9457 = vmatprep.mubr.f32.mxu1 %v10427_v37 }
  0xb7   : > { %9460 = vmatprep.subr.mxu0 %v10349_v4  ;;  %9451 = vmatmul.mubr.f32.vlgmr.msra.gmra.mxu0 %v10509_v26 }
  0xb8   : > { %9458 = vmatmul.mubr.f32.vlgmr.msra.gmra.mxu1 %v10435_v38  ;;  %9461 = vmatpush3.msra.mxu0 %v10349_v4 }
  0xb9   : > { %9467 = vmatprep.subr.msk.mxu1 %vm10310_vm7, %v9966_v7  ;;  %9462 = vmatprep.subr.mxu0 %v10355_v9 }
  0xba   : > { %9468 = vmatpush3.msk.msra.mxu1 %vm10310_vm7, %v9966_v7  ;;  %9463 = vmatpush3.msra.mxu0 %v10355_v9 }
  0xbb   : > { %9469 = vmatprep.subr.msk.mxu1 %vm10325_vm8, %v9966_v7  ;;  %9464 = vmatprep.mubr.f32.mxu0 %v10442_v40 }
  0xbc   : > { %9470 = vmatpush3.msk.msra.mxu1 %vm10325_vm8, %v9966_v7  ;;  %9471 = vmatprep.mubr.f32.mxu1 %v10462_v43 }
  0xbd   : > { %9474 = vmatprep.subr.mxu0 %v10364_v8  ;;  %9465 = vmatmul.mubr.f32.vlgmr.msra.gmra.mxu0 %v10451_v41 }
  0xbe   : > { %9472 = vmatmul.mubr.f32.vlgmr.msra.gmra.mxu1 %v10471_v46  ;;  %9475 = vmatpush3.msra.mxu0 %v10364_v8 }
  0xbf   : > { %9481 = vmatprep.subr.msk.mxu1 %vm10310_vm7, %v9966_v7  ;;  %9476 = vmatprep.subr.mxu0 %v10376_v11 }
  0xc0   : > { %9482 = vmatpush3.msk.msra.mxu1 %vm10310_vm7, %v9966_v7  ;;  %9477 = vmatpush3.msra.mxu0 %v10376_v11 }
  0xc1   : > { %9483 = vmatprep.subr.msk.mxu1 %vm10325_vm8, %v9966_v7  ;;  %9478 = vmatprep.mubr.f32.mxu0 %v10427_v37 }
  0xc2   : > { %9484 = vmatpush3.msk.msra.mxu1 %vm10325_vm8, %v9966_v7  ;;  %9485 = vmatprep.mubr.f32.mxu1 %v10427_v37  ;;  %v8723_v37 = vld [vmem:[%s10047_s15 + $0x33] ss:$4 sm:$0xf] }
  0xc3   : > { %9488 = vmatprep.subr.msk.mxu0 %vm10062_vm0, %v9966_v7  ;;  %9479 = vmatmul.mubr.f32.vlgmr.msra.gmra.mxu0 %v10435_v38  ;;  %v6422_v40 = vcombine.low %v8722_v34, %v8723_v37 }
  0xc4   : > { %9486 = vmatmul.mubr.f32.vlgmr.msra.gmra.mxu1 %v10435_v38  ;;  %9489 = vmatpush3.msk.msra.mxu0 %vm10062_vm0, %v9966_v7  ;;  %v6421_v38 = vcombine.low %v8720_v22, %v8721_v25 }
  0xc5   : > { %9495 = vmatprep.subr.mxu1 %v10121_v29  ;;  %9490 = vmatprep.subr.msk.mxu0 %vm10068_vm1, %v9966_v7  ;;  %v6425_v46 = vsel %vm212_vm2, %v6422_v40, 0 }
  0xc6   : > { %9496 = vmatpush3.msra.mxu1 %v10121_v29  ;;  %9491 = vmatpush3.msk.msra.mxu0 %vm10068_vm1, %v9966_v7  ;;  %v6423_v41 = vsel %vm212_vm2, %v6421_v38, 0  ;;  %v10976_v26 = vand.u32 4294901760, %v6425_v46 }
  0xc7   : > { %9497 = vmatprep.subr.mxu1 %v10123_v30  ;;  %9492 = vmatprep.mubr.f32.mxu0 %v10769_v18  ;;  %v10967_v31 = vand.u32 4294901760, %v6423_v41 }
  0xc8   : > { %9498 = vmatpush3.msra.mxu1 %v10123_v30  ;;  %9499 = vmatprep.mubr.f32.mxu1 %v10697_v61  ;;  %v10997_v54 = vsub.f32 %v6425_v46, %v10976_v26 }
  0xc9   : > { %9502 = vmatprep.subr.mxu0 %v10086_v13  ;;  %9493 = vmatmul.mubr.f32.vlgmr.msra.gmra.mxu0 %v10779_v21  ;;  %v10983_v47 = vsub.f32 %v6423_v41, %v10967_v31 }
  0xca   : > { %9500 = vmatmul.mubr.f32.vlgmr.msra.gmra.mxu1 %v10705_v3  ;;  %9503 = vmatpush3.msra.mxu0 %v10086_v13  ;;  %v11018_v25 = vand.u32 4294901760, %v10997_v54 }
  0xcb   : > { %9509 = vmatprep.subr.msk.mxu1 %vm10062_vm0, %v9966_v7  ;;  %9504 = vmatprep.subr.mxu0 %v10088_v14 }
  0xcc   : > { %9510 = vmatpush3.msk.msra.mxu1 %vm10062_vm0, %v9966_v7  ;;  %9505 = vmatpush3.msra.mxu0 %v10088_v14 }
  0xcd   : > { %9511 = vmatprep.subr.msk.mxu1 %vm10068_vm1, %v9966_v7  ;;  %9506 = vmatprep.mubr.f32.mxu0 %v10712_v1 }
  0xce   : > { %9512 = vmatpush3.msk.msra.mxu1 %vm10068_vm1, %v9966_v7  ;;  %9513 = vmatprep.mubr.f32.mxu1 %v10732_v12 }
  0xcf   : > { %9516 = vmatprep.subr.mxu0 %v10097_v19  ;;  %9507 = vmatmul.mubr.f32.vlgmr.msra.gmra.mxu0 %v10721_v10 }
  0xd0   : > { %9514 = vmatmul.mubr.f32.vlgmr.msra.gmra.mxu1 %v10741_v15  ;;  %9517 = vmatpush3.msra.mxu0 %v10097_v19 }
  0xd1   : > { %9523 = vmatprep.subr.msk.mxu1 %vm10062_vm0, %v9966_v7  ;;  %9518 = vmatprep.subr.mxu0 %v10103_v20 }
  0xd2   : > { %9524 = vmatpush3.msk.msra.mxu1 %vm10062_vm0, %v9966_v7  ;;  %9519 = vmatpush3.msra.mxu0 %v10103_v20 }
  0xd3   : > { %9525 = vmatprep.subr.msk.mxu1 %vm10068_vm1, %v9966_v7  ;;  %9520 = vmatprep.mubr.f32.mxu0 %v10697_v61 }
  0xd4   : > { %9526 = vmatpush3.msk.msra.mxu1 %vm10068_vm1, %v9966_v7  ;;  %9527 = vmatprep.mubr.f32.mxu1 %v10697_v61 }
  0xd5   : > { %9530 = vmatprep.subr.msk.mxu0 %vm10108_vm3, %v9966_v7  ;;  %9521 = vmatmul.mubr.f32.vlgmr.msra.gmra.mxu0 %v10705_v3 }
  0xd6   : > { %9528 = vmatmul.mubr.f32.vlgmr.msra.gmra.mxu1 %v10705_v3  ;;  %9531 = vmatpush3.msk.msra.mxu0 %vm10108_vm3, %v9966_v7 }
  0xd7   : > { %9537 = vmatprep.subr.mxu1 %v10212_v49  ;;  %9532 = vmatprep.subr.msk.mxu0 %vm10130_vm4, %v9966_v7 }
  0xd8   : > { %9538 = vmatpush3.msra.mxu1 %v10212_v49  ;;  %9533 = vmatpush3.msk.msra.mxu0 %vm10130_vm4, %v9966_v7 }
  0xd9   : > { %9539 = vmatprep.subr.mxu1 %v10227_v51  ;;  %9534 = vmatprep.mubr.f32.mxu0 %v10769_v18 }
  0xda   : > { %9540 = vmatpush3.msra.mxu1 %v10227_v51  ;;  %9541 = vmatprep.mubr.f32.mxu1 %v10697_v61 }
  0xdb   : > { %9544 = vmatprep.subr.mxu0 %v10154_v39  ;;  %9535 = vmatmul.mubr.f32.vlgmr.msra.gmra.mxu0 %v10779_v21 }
  0xdc   : > { %9542 = vmatmul.mubr.f32.vlgmr.msra.gmra.mxu1 %v10705_v3  ;;  %9545 = vmatpush3.msra.mxu0 %v10154_v39 }
  0xdd   : > { %9551 = vmatprep.subr.msk.mxu1 %vm10108_vm3, %v9966_v7  ;;  %9546 = vmatprep.subr.mxu0 %v10165_v42 }
  0xde   : > { %9552 = vmatpush3.msk.msra.mxu1 %vm10108_vm3, %v9966_v7  ;;  %9547 = vmatpush3.msra.mxu0 %v10165_v42 }
  0xdf   : > { %9553 = vmatprep.subr.msk.mxu1 %vm10130_vm4, %v9966_v7  ;;  %9548 = vmatprep.mubr.f32.mxu0 %v10712_v1 }
  0xe0   : > { %9554 = vmatpush3.msk.msra.mxu1 %vm10130_vm4, %v9966_v7  ;;  %9555 = vmatprep.mubr.f32.mxu1 %v10732_v12 }
  0xe1   : > { %9558 = vmatprep.subr.mxu0 %v10178_v44  ;;  %9549 = vmatmul.mubr.f32.vlgmr.msra.gmra.mxu0 %v10721_v10 }
  0xe2   : > { %9556 = vmatmul.mubr.f32.vlgmr.msra.gmra.mxu1 %v10741_v15  ;;  %9559 = vmatpush3.msra.mxu0 %v10178_v44 }
  0xe3   : > { %9565 = vmatprep.subr.msk.mxu1 %vm10108_vm3, %v9966_v7  ;;  %9560 = vmatprep.subr.mxu0 %v10187_v45 }
  0xe4   : > { %9566 = vmatpush3.msk.msra.mxu1 %vm10108_vm3, %v9966_v7  ;;  %9561 = vmatpush3.msra.mxu0 %v10187_v45 }
  0xe5   : > { %9567 = vmatprep.subr.msk.mxu1 %vm10130_vm4, %v9966_v7  ;;  %9562 = vmatprep.mubr.f32.mxu0 %v10697_v61 }
  0xe6   : > { %9568 = vmatpush3.msk.msra.mxu1 %vm10130_vm4, %v9966_v7  ;;  %9569 = vmatprep.mubr.f32.mxu1 %v10697_v61 }
  0xe7   : > { %9572 = vmatprep.subr.msk.mxu0 %vm10215_vm5, %v9966_v7  ;;  %9563 = vmatmul.mubr.f32.vlgmr.msra.gmra.mxu0 %v10705_v3 }
  0xe8   : > { %9570 = vmatmul.mubr.f32.vlgmr.msra.gmra.mxu1 %v10705_v3  ;;  %9573 = vmatpush3.msk.msra.mxu0 %vm10215_vm5, %v9966_v7 }
  0xe9   : > { %9579 = vmatprep.subr.mxu1 %v10307_v62  ;;  %9574 = vmatprep.subr.msk.mxu0 %vm10230_vm6, %v9966_v7 }
  0xea   : > { %9580 = vmatpush3.msra.mxu1 %v10307_v62  ;;  %9575 = vmatpush3.msk.msra.mxu0 %vm10230_vm6, %v9966_v7 }
  0xeb   : > { %9581 = vmatprep.subr.mxu1 %v10322_v0  ;;  %9576 = vmatprep.mubr.f32.mxu0 %v10769_v18 }
  0xec   : > { %9582 = vmatpush3.msra.mxu1 %v10322_v0  ;;  %9583 = vmatprep.mubr.f32.mxu1 %v10697_v61 }
  0xed   : > { %9586 = vmatprep.subr.mxu0 %v10254_v55  ;;  %9577 = vmatmul.mubr.f32.vlgmr.msra.gmra.mxu0 %v10779_v21 }
  0xee   : > { %9584 = vmatmul.mubr.f32.vlgmr.msra.gmra.mxu1 %v10705_v3  ;;  %9587 = vmatpush3.msra.mxu0 %v10254_v55 }
  0xef   : > { %9593 = vmatprep.subr.msk.mxu1 %vm10215_vm5, %v9966_v7  ;;  %9588 = vmatprep.subr.mxu0 %v10260_v56 }
  0xf0   : > { %9594 = vmatpush3.msk.msra.mxu1 %vm10215_vm5, %v9966_v7  ;;  %9589 = vmatpush3.msra.mxu0 %v10260_v56 }
  0xf1   : > { %9595 = vmatprep.subr.msk.mxu1 %vm10230_vm6, %v9966_v7  ;;  %9590 = vmatprep.mubr.f32.mxu0 %v10712_v1 }
  0xf2   : > { %9596 = vmatpush3.msk.msra.mxu1 %vm10230_vm6, %v9966_v7  ;;  %9597 = vmatprep.mubr.f32.mxu1 %v10732_v12 }
  0xf3   : > { %9600 = vmatprep.subr.mxu0 %v10269_v57  ;;  %9591 = vmatmul.mubr.f32.vlgmr.msra.gmra.mxu0 %v10721_v10 }
  0xf4   : > { %9598 = vmatmul.mubr.f32.vlgmr.msra.gmra.mxu1 %v10741_v15  ;;  %9601 = vmatpush3.msra.mxu0 %v10269_v57 }
  0xf5   : > { %9607 = vmatprep.subr.msk.mxu1 %vm10215_vm5, %v9966_v7  ;;  %9602 = vmatprep.subr.mxu0 %v10280_v58 }
  0xf6   : > { %9608 = vmatpush3.msk.msra.mxu1 %vm10215_vm5, %v9966_v7  ;;  %9603 = vmatpush3.msra.mxu0 %v10280_v58 }
  0xf7   : > { %9609 = vmatprep.subr.msk.mxu1 %vm10230_vm6, %v9966_v7  ;;  %9604 = vmatprep.mubr.f32.mxu0 %v10697_v61 }
  0xf8   : > { %9610 = vmatpush3.msk.msra.mxu1 %vm10230_vm6, %v9966_v7  ;;  %9611 = vmatprep.mubr.f32.mxu1 %v10697_v61  ;;  %v9158_v35 = vpop.f32.mrf.mxu0 }
  0xf9   : > { %9614 = vmatprep.subr.msk.mxu0 %vm10310_vm7, %v9966_v7  ;;  %9605 = vmatmul.mubr.f32.vlgmr.msra.gmra.mxu0 %v10705_v3 }
  0xfa   : > { %9612 = vmatmul.mubr.f32.vlgmr.msra.gmra.mxu1 %v10705_v3  ;;  %9615 = vmatpush3.msk.msra.mxu0 %vm10310_vm7, %v9966_v7  ;;  %v290_v28 = vpop.f32.mrf.mxu0 }
  0xfb   : > { %v9165_v43 = vpop.f32.mrf.mxu1  ;;  %9621 = vmatprep.subr.mxu1 %v10405_v24  ;;  %9616 = vmatprep.subr.msk.mxu0 %vm10325_vm8, %v9966_v7 }
  0xfc   : > { %9622 = vmatpush3.msra.mxu1 %v10405_v24  ;;  %9617 = vmatpush3.msk.msra.mxu0 %vm10325_vm8, %v9966_v7  ;;  %v388_v48 = vadd.f32 %v9165_v43, %v9158_v35  ;;  %v6507_v43 = vsub.f32 %v10997_v54, %v11018_v25 }
  0xfd   : > { %v381_v33 = vpop.f32.mrf.mxu1  ;;  %9623 = vmatprep.subr.mxu1 %v10416_v27  ;;  %9618 = vmatprep.mubr.f32.mxu0 %v10769_v18  ;;  %v11008_v18 = vand.u32 4294901760, %v10983_v47 }
  0xfe   : > { %9624 = vmatpush3.msra.mxu1 %v10416_v27  ;;  %9625 = vmatprep.mubr.f32.mxu1 %v10697_v61  ;;  %v382_v59 = vadd.f32 %v381_v33, %v290_v28 }
  0xff   : > { %v9179_v36 = vpop.f32.mrf.mxu1  ;;  %9628 = vmatprep.subr.mxu0 %v10349_v4  ;;  %9619 = vmatmul.mubr.f32.vlgmr.msra.gmra.mxu0 %v10779_v21 }
 0x100   : > { %9626 = vmatmul.mubr.f32.vlgmr.msra.gmra.mxu1 %v10705_v3  ;;  %9629 = vmatpush3.msra.mxu0 %v10349_v4  ;;  %v9172_v53 = vpop.f32.mrf.mxu0 }
 0x101   : > { %9635 = vmatprep.subr.msk.mxu1 %vm10310_vm7, %v9966_v7  ;;  %9630 = vmatprep.subr.mxu0 %v10355_v9  ;;  %v471_v60 = vadd.f32 %v9172_v53, %v388_v48  ;;  %v545_v17 = vpop.f32.mrf.mxu1  ;;  %v11067_v48 = vand.u32 4294901760, %v6507_v43 }
 0x102   : > { %9636 = vmatpush3.msk.msra.mxu1 %vm10310_vm7, %v9966_v7  ;;  %9631 = vmatpush3.msra.mxu0 %v10355_v9  ;;  %v463_v16 = vpop.f32.mrf.mxu0 }
 0x103   : > { %9637 = vmatprep.subr.msk.mxu1 %vm10325_vm8, %v9966_v7  ;;  %9632 = vmatprep.mubr.f32.mxu0 %v10712_v1  ;;  %v554_v21 = vadd.f32 %v9179_v36, %v471_v60  ;;  %v464_v22 = vadd.f32 %v463_v16, %v382_v59 }
 0x104   : > { %9638 = vmatpush3.msk.msra.mxu1 %vm10325_vm8, %v9966_v7  ;;  %9639 = vmatprep.mubr.f32.mxu1 %v10732_v12 }
 0x105   : > { %9642 = vmatprep.subr.mxu0 %v10364_v8  ;;  %9633 = vmatmul.mubr.f32.vlgmr.msra.gmra.mxu0 %v10721_v10  ;;  %v546_v1 = vadd.f32 %v545_v17, %v464_v22  ;;  %v9186_v34 = vpop.f32.mrf.mxu0  ;;  %v6497_v10 = vsub.f32 %v10983_v47, %v11008_v18 }
 0x106   : > { %9640 = vmatmul.mubr.f32.vlgmr.msra.gmra.mxu1 %v10741_v15  ;;  %9643 = vmatpush3.msra.mxu0 %v10364_v8  ;;  %v637_v37 = vadd.f32 %v9186_v34, %v554_v21  ;;  %v9193_v38 = vpop.f32.mrf.mxu1 }
 0x107   : > { %9649 = vmatprep.subr.msk.mxu1 %vm10310_vm7, %v9966_v7  ;;  %9644 = vmatprep.subr.mxu0 %v10376_v11  ;;  %v630_v12 = vpop.f32.mrf.mxu0  ;;  %v11053_v35 = vand.u32 4294901760, %v6497_v10 }
 0x108   : > { %9650 = vmatpush3.msk.msra.mxu1 %vm10310_vm7, %v9966_v7  ;;  %9645 = vmatpush3.msra.mxu0 %v10376_v11  ;;  %v716_v15 = vadd.f32 %v9193_v38, %v637_v37  ;;  %v631_v40 = vadd.f32 %v630_v12, %v546_v1  ;;  %v709_v41 = vpop.f32.mrf.mxu1 }
 0x109   : > { %9651 = vmatprep.subr.msk.mxu1 %vm10325_vm8, %v9966_v7  ;;  %9646 = vmatprep.mubr.f32.mxu0 %v10697_v61 }
 0x10a   : > { %9652 = vmatpush3.msk.msra.mxu1 %vm10325_vm8, %v9966_v7  ;;  %9653 = vmatprep.mubr.f32.mxu1 %v10697_v61  ;;  %v722_v46 = vcombine.high %v716_v15, %v716_v15  ;;  %728 = vst.msk [vmem:[%s11031_s19 + $0x8] sm:$0xf] %vm725_vm9, %v716_v15  ;;  %v710_v33 = vadd.f32 %v709_v41, %v631_v40 }
 0x10b   : > { %9656 = vmatprep.subr.msk.mxu0 %vm10062_vm0, %v9966_v7  ;;  %9647 = vmatmul.mubr.f32.vlgmr.msra.gmra.mxu0 %v10705_v3  ;;  %v9200_v28 = vpop.f32.mrf.mxu0 }
 0x10c   : > { %9654 = vmatmul.mubr.f32.vlgmr.msra.gmra.mxu1 %v10705_v3  ;;  %9657 = vmatpush3.msk.msra.mxu0 %vm10062_vm0, %v9966_v7  ;;  %729 = vst.msk [vmem:[%s11031_s19 + $0xc] sm:$0xf] %vm725_vm9, %v722_v46  ;;  %v721_v61 = vcombine.high %v710_v33, %v710_v33  ;;  %726 = vst.msk [vmem:[%s11031_s19] sm:$0xf] %vm725_vm9, %v710_v33  ;;  %v9207_v36 = vpop.f32.mrf.mxu1 }
 0x10d   : > { %9663 = vmatprep.subr.mxu1 %v10121_v29  ;;  %9658 = vmatprep.subr.msk.mxu0 %vm10068_vm1, %v9966_v7  ;;  %v803_v53 = vpop.f32.mrf.mxu0  ;;  %v901_v59 = vadd.f32 %v9207_v36, %v9200_v28 }
 0x10e   : > { %9664 = vmatpush3.msra.mxu1 %v10121_v29  ;;  %9659 = vmatpush3.msk.msra.mxu0 %vm10068_vm1, %v9966_v7  ;;  %727 = vst.msk [vmem:[%s11031_s19 + $0x4] sm:$0xf] %vm725_vm9, %v721_v61  ;;  %v894_v3 = vpop.f32.mrf.mxu1 }
 0x10f   : > { %9665 = vmatprep.subr.mxu1 %v10123_v30  ;;  %9660 = vmatprep.mubr.f32.mxu0 %v11053_v35  ;;  %v895_v60 = vadd.f32 %v894_v3, %v803_v53 }
 0x110   : > { %9666 = vmatpush3.msra.mxu1 %v10123_v30  ;;  %9667 = vmatprep.mubr.f32.mxu1 %v10967_v31 }
 0x111   : > { %9670 = vmatprep.subr.mxu0 %v10086_v13  ;;  %9661 = vmatmul.mubr.f32.vlgmr.msra.gmra.mxu0 %v11067_v48  ;;  %v9214_v29 = vpop.f32.mrf.mxu0 }
 0x112   : > { %9668 = vmatmul.mubr.f32.vlgmr.msra.gmra.mxu1 %v10976_v26  ;;  %9671 = vmatpush3.msra.mxu0 %v10086_v13  ;;  %v984_v16 = vadd.f32 %v9214_v29, %v901_v59  ;;  %v9221_v17 = vpop.f32.mrf.mxu1 }
 0x113   : > { %9677 = vmatprep.subr.msk.mxu1 %vm10062_vm0, %v9966_v7  ;;  %9672 = vmatprep.subr.mxu0 %v10088_v14  ;;  %v976_v30 = vpop.f32.mrf.mxu0 }
 0x114   : > { %9678 = vmatpush3.msk.msra.mxu1 %vm10062_vm0, %v9966_v7  ;;  %9673 = vmatpush3.msra.mxu0 %v10088_v14  ;;  %v1067_v21 = vadd.f32 %v9221_v17, %v984_v16  ;;  %v977_v22 = vadd.f32 %v976_v30, %v895_v60  ;;  %v1058_v1 = vpop.f32.mrf.mxu1 }
 0x115   : > { %9679 = vmatprep.subr.msk.mxu1 %vm10068_vm1, %v9966_v7  ;;  %9674 = vmatprep.mubr.f32.mxu0 %v10983_v47 }
 0x116   : > { %9680 = vmatpush3.msk.msra.mxu1 %vm10068_vm1, %v9966_v7  ;;  %9681 = vmatprep.mubr.f32.mxu1 %v11008_v18  ;;  %v1059_v13 = vadd.f32 %v1058_v1, %v977_v22 }
 0x117   : > { %9684 = vmatprep.subr.mxu0 %v10097_v19  ;;  %9675 = vmatmul.mubr.f32.vlgmr.msra.gmra.mxu0 %v10997_v54  ;;  %v9228_v14 = vpop.f32.mrf.mxu0 }
 0x118   : > { %9682 = vmatmul.mubr.f32.vlgmr.msra.gmra.mxu1 %v11018_v25  ;;  %9685 = vmatpush3.msra.mxu0 %v10097_v19  ;;  %v1150_v34 = vadd.f32 %v9228_v14, %v1067_v21  ;;  %v9235_v37 = vpop.f32.mrf.mxu1 }
 0x119   : > { %9691 = vmatprep.subr.msk.mxu1 %vm10062_vm0, %v9966_v7  ;;  %9686 = vmatprep.subr.mxu0 %v10103_v20  ;;  %v1143_v38 = vpop.f32.mrf.mxu0 }
 0x11a   : > { %9692 = vmatpush3.msk.msra.mxu1 %vm10062_vm0, %v9966_v7  ;;  %9687 = vmatpush3.msra.mxu0 %v10103_v20  ;;  %v1229_v10 = vadd.f32 %v9235_v37, %v1150_v34  ;;  %v1144_v12 = vadd.f32 %v1143_v38, %v1059_v13  ;;  %v1222_v19 = vpop.f32.mrf.mxu1 }
 0x11b   : > { %9693 = vmatprep.subr.msk.mxu1 %vm10068_vm1, %v9966_v7  ;;  %9688 = vmatprep.mubr.f32.mxu0 %v10967_v31 }
 0x11c   : > { %9694 = vmatpush3.msk.msra.mxu1 %vm10068_vm1, %v9966_v7  ;;  %9695 = vmatprep.mubr.f32.mxu1 %v10967_v31  ;;  %v1235_v5 = vcombine.high %v1229_v10, %v1229_v10  ;;  %8610 = vst.msk [vmem:[%s11031_s19 + $0x18] sm:$0xf] %vm725_vm9, %v1229_v10  ;;  %v1223_v20 = vadd.f32 %v1222_v19, %v1144_v12 }
 0x11d   : > { %9698 = vmatprep.subr.msk.mxu0 %vm10108_vm3, %v9966_v7  ;;  %9689 = vmatmul.mubr.f32.vlgmr.msra.gmra.mxu0 %v10976_v26  ;;  %v9242_v15 = vpop.f32.mrf.mxu0 }
 0x11e   : > { %9696 = vmatmul.mubr.f32.vlgmr.msra.gmra.mxu1 %v10976_v26  ;;  %9699 = vmatpush3.msk.msra.mxu0 %vm10108_vm3, %v9966_v7  ;;  %8611 = vst.msk [vmem:[%s11031_s19 + $0x1c] sm:$0xf] %vm725_vm9, %v1235_v5  ;;  %v1234_v6 = vcombine.high %v1223_v20, %v1223_v20  ;;  %8608 = vst.msk [vmem:[%s11031_s19 + $0x10] sm:$0xf] %vm725_vm9, %v1223_v20  ;;  %v9249_v40 = vpop.f32.mrf.mxu1 }
 0x11f   : > { %9705 = vmatprep.subr.mxu1 %v10212_v49  ;;  %9700 = vmatprep.subr.msk.mxu0 %vm10130_vm4, %v9966_v7  ;;  %v1316_v41 = vpop.f32.mrf.mxu0  ;;  %v1414_v46 = vadd.f32 %v9249_v40, %v9242_v15 }
 0x120   : > { %9706 = vmatpush3.msra.mxu1 %v10212_v49  ;;  %9701 = vmatpush3.msk.msra.mxu0 %vm10130_vm4, %v9966_v7  ;;  %8609 = vst.msk [vmem:[%s11031_s19 + $0x14] sm:$0xf] %vm725_vm9, %v1234_v6  ;;  %v1407_v43 = vpop.f32.mrf.mxu1 }
 0x121   : > { %9707 = vmatprep.subr.mxu1 %v10227_v51  ;;  %9702 = vmatprep.mubr.f32.mxu0 %v11053_v35  ;;  %v1408_v33 = vadd.f32 %v1407_v43, %v1316_v41 }
 0x122   : > { %9708 = vmatpush3.msra.mxu1 %v10227_v51  ;;  %9709 = vmatprep.mubr.f32.mxu1 %v10967_v31 }
 0x123   : > { %9712 = vmatprep.subr.mxu0 %v10154_v39  ;;  %9703 = vmatmul.mubr.f32.vlgmr.msra.gmra.mxu0 %v11067_v48  ;;  %v9256_v49 = vpop.f32.mrf.mxu0 }
 0x124   : > { %9710 = vmatmul.mubr.f32.vlgmr.msra.gmra.mxu1 %v10976_v26  ;;  %9713 = vmatpush3.msra.mxu0 %v10154_v39  ;;  %v1497_v28 = vadd.f32 %v9256_v49, %v1414_v46  ;;  %v9263_v61 = vpop.f32.mrf.mxu1 }
 0x125   : > { %9719 = vmatprep.subr.msk.mxu1 %vm10108_vm3, %v9966_v7  ;;  %9714 = vmatprep.subr.mxu0 %v10165_v42  ;;  %v1489_v51 = vpop.f32.mrf.mxu0 }
 0x126   : > { %9720 = vmatpush3.msk.msra.mxu1 %vm10108_vm3, %v9966_v7  ;;  %9715 = vmatpush3.msra.mxu0 %v10165_v42  ;;  %v1580_v36 = vadd.f32 %v9263_v61, %v1497_v28  ;;  %v1490_v53 = vadd.f32 %v1489_v51, %v1408_v33  ;;  %v1571_v3 = vpop.f32.mrf.mxu1 }
 0x127   : > { %9721 = vmatprep.subr.msk.mxu1 %vm10130_vm4, %v9966_v7  ;;  %9716 = vmatprep.mubr.f32.mxu0 %v10983_v47 }
 0x128   : > { %9722 = vmatpush3.msk.msra.mxu1 %vm10130_vm4, %v9966_v7  ;;  %9723 = vmatprep.mubr.f32.mxu1 %v11008_v18  ;;  %v1572_v39 = vadd.f32 %v1571_v3, %v1490_v53 }
 0x129   : > { %9726 = vmatprep.subr.mxu0 %v10178_v44  ;;  %9717 = vmatmul.mubr.f32.vlgmr.msra.gmra.mxu0 %v10997_v54  ;;  %v9270_v42 = vpop.f32.mrf.mxu0 }
 0x12a   : > { %9724 = vmatmul.mubr.f32.vlgmr.msra.gmra.mxu1 %v11018_v25  ;;  %9727 = vmatpush3.msra.mxu0 %v10178_v44  ;;  %v1663_v59 = vadd.f32 %v9270_v42, %v1580_v36  ;;  %v9277_v29 = vpop.f32.mrf.mxu1 }
 0x12b   : > { %9733 = vmatprep.subr.msk.mxu1 %vm10108_vm3, %v9966_v7  ;;  %9728 = vmatprep.subr.mxu0 %v10187_v45  ;;  %v1656_v60 = vpop.f32.mrf.mxu0 }
 0x12c   : > { %9734 = vmatpush3.msk.msra.mxu1 %vm10108_vm3, %v9966_v7  ;;  %9729 = vmatpush3.msra.mxu0 %v10187_v45  ;;  %v1742_v16 = vadd.f32 %v9277_v29, %v1663_v59  ;;  %v1657_v17 = vadd.f32 %v1656_v60, %v1572_v39  ;;  %v1735_v44 = vpop.f32.mrf.mxu1 }
 0x12d   : > { %9735 = vmatprep.subr.msk.mxu1 %vm10130_vm4, %v9966_v7  ;;  %9730 = vmatprep.mubr.f32.mxu0 %v10967_v31 }
 0x12e   : > { %9736 = vmatpush3.msk.msra.mxu1 %vm10130_vm4, %v9966_v7  ;;  %9737 = vmatprep.mubr.f32.mxu1 %v10967_v31  ;;  %v1748_v23 = vcombine.high %v1742_v16, %v1742_v16  ;;  %8620 = vst.msk [vmem:[%s11031_s19 + $0x28] sm:$0xf] %vm725_vm9, %v1742_v16  ;;  %v1736_v45 = vadd.f32 %v1735_v44, %v1657_v17 }
 0x12f   : > { %9740 = vmatprep.subr.msk.mxu0 %vm10215_vm5, %v9966_v7  ;;  %9731 = vmatmul.mubr.f32.vlgmr.msra.gmra.mxu0 %v10976_v26  ;;  %v9284_v30 = vpop.f32.mrf.mxu0 }
 0x130   : > { %9738 = vmatmul.mubr.f32.vlgmr.msra.gmra.mxu1 %v10976_v26  ;;  %9741 = vmatpush3.msk.msra.mxu0 %vm10215_vm5, %v9966_v7  ;;  %8621 = vst.msk [vmem:[%s11031_s19 + $0x2c] sm:$0xf] %vm725_vm9, %v1748_v23  ;;  %v1747_v32 = vcombine.high %v1736_v45, %v1736_v45  ;;  %8618 = vst.msk [vmem:[%s11031_s19 + $0x20] sm:$0xf] %vm725_vm9, %v1736_v45  ;;  %v9291_v21 = vpop.f32.mrf.mxu1 }
 0x131   : > { %9747 = vmatprep.subr.mxu1 %v10307_v62  ;;  %9742 = vmatprep.subr.msk.mxu0 %vm10230_vm6, %v9966_v7  ;;  %v1829_v22 = vpop.f32.mrf.mxu0  ;;  %v1927_v13 = vadd.f32 %v9291_v21, %v9284_v30 }
 0x132   : > { %9748 = vmatpush3.msra.mxu1 %v10307_v62  ;;  %9743 = vmatpush3.msk.msra.mxu0 %vm10230_vm6, %v9966_v7  ;;  %8619 = vst.msk [vmem:[%s11031_s19 + $0x24] sm:$0xf] %vm725_vm9, %v1747_v32  ;;  %v1920_v1 = vpop.f32.mrf.mxu1 }
 0x133   : > { %9749 = vmatprep.subr.mxu1 %v10322_v0  ;;  %9744 = vmatprep.mubr.f32.mxu0 %v11053_v35  ;;  %v1921_v14 = vadd.f32 %v1920_v1, %v1829_v22 }
 0x134   : > { %9750 = vmatpush3.msra.mxu1 %v10322_v0  ;;  %9751 = vmatprep.mubr.f32.mxu1 %v10967_v31 }
 0x135   : > { %9754 = vmatprep.subr.mxu0 %v10254_v55  ;;  %9745 = vmatmul.mubr.f32.vlgmr.msra.gmra.mxu0 %v11067_v48  ;;  %v9298_v62 = vpop.f32.mrf.mxu0 }
 0x136   : > { %9752 = vmatmul.mubr.f32.vlgmr.msra.gmra.mxu1 %v10976_v26  ;;  %9755 = vmatpush3.msra.mxu0 %v10254_v55  ;;  %v2010_v34 = vadd.f32 %v9298_v62, %v1927_v13  ;;  %v9305_v37 = vpop.f32.mrf.mxu1 }
 0x137   : > { %9761 = vmatprep.subr.msk.mxu1 %vm10215_vm5, %v9966_v7  ;;  %9756 = vmatprep.subr.mxu0 %v10260_v56  ;;  %v2002_v0 = vpop.f32.mrf.mxu0 }
 0x138   : > { %9762 = vmatpush3.msk.msra.mxu1 %vm10215_vm5, %v9966_v7  ;;  %9757 = vmatpush3.msra.mxu0 %v10260_v56  ;;  %v2093_v38 = vadd.f32 %v9305_v37, %v2010_v34  ;;  %v2003_v10 = vadd.f32 %v2002_v0, %v1921_v14  ;;  %v2084_v12 = vpop.f32.mrf.mxu1 }
 0x139   : > { %9763 = vmatprep.subr.msk.mxu1 %vm10230_vm6, %v9966_v7  ;;  %9758 = vmatprep.mubr.f32.mxu0 %v10983_v47 }
 0x13a   : > { %9764 = vmatpush3.msk.msra.mxu1 %vm10230_vm6, %v9966_v7  ;;  %9765 = vmatprep.mubr.f32.mxu1 %v11008_v18  ;;  %v2085_v55 = vadd.f32 %v2084_v12, %v2003_v10 }
 0x13b   : > { %9768 = vmatprep.subr.mxu0 %v10269_v57  ;;  %9759 = vmatmul.mubr.f32.vlgmr.msra.gmra.mxu0 %v10997_v54  ;;  %v9312_v56 = vpop.f32.mrf.mxu0 }
 0x13c   : > { %9766 = vmatmul.mubr.f32.vlgmr.msra.gmra.mxu1 %v11018_v25  ;;  %9769 = vmatpush3.msra.mxu0 %v10269_v57  ;;  %v2176_v19 = vadd.f32 %v9312_v56, %v2093_v38  ;;  %v9319_v5 = vpop.f32.mrf.mxu1 }
 0x13d   : > { %9775 = vmatprep.subr.msk.mxu1 %vm10215_vm5, %v9966_v7  ;;  %9770 = vmatprep.subr.mxu0 %v10280_v58  ;;  %v2169_v20 = vpop.f32.mrf.mxu0 }
 0x13e   : > { %9776 = vmatpush3.msk.msra.mxu1 %vm10215_vm5, %v9966_v7  ;;  %9771 = vmatpush3.msra.mxu0 %v10280_v58  ;;  %v2255_v15 = vadd.f32 %v9319_v5, %v2176_v19  ;;  %v2170_v6 = vadd.f32 %v2169_v20, %v2085_v55  ;;  %v2248_v57 = vpop.f32.mrf.mxu1 }
 0x13f   : > { %9777 = vmatprep.subr.msk.mxu1 %vm10230_vm6, %v9966_v7  ;;  %9772 = vmatprep.mubr.f32.mxu0 %v10967_v31 }
 0x140   : > { %9778 = vmatpush3.msk.msra.mxu1 %vm10230_vm6, %v9966_v7  ;;  %9779 = vmatprep.mubr.f32.mxu1 %v10967_v31  ;;  %v2261_v50 = vcombine.high %v2255_v15, %v2255_v15  ;;  %8630 = vst.msk [vmem:[%s11031_s19 + $0x38] sm:$0xf] %vm725_vm9, %v2255_v15  ;;  %v2249_v58 = vadd.f32 %v2248_v57, %v2170_v6 }
 0x141   : > { %9782 = vmatprep.subr.msk.mxu0 %vm10310_vm7, %v9966_v7  ;;  %9773 = vmatmul.mubr.f32.vlgmr.msra.gmra.mxu0 %v10976_v26  ;;  %v9326_v40 = vpop.f32.mrf.mxu0 }
 0x142   : > { %9780 = vmatmul.mubr.f32.vlgmr.msra.gmra.mxu1 %v10976_v26  ;;  %9783 = vmatpush3.msk.msra.mxu0 %vm10310_vm7, %v9966_v7  ;;  %8631 = vst.msk [vmem:[%s11031_s19 + $0x3c] sm:$0xf] %vm725_vm9, %v2261_v50  ;;  %v2260_v52 = vcombine.high %v2249_v58, %v2249_v58  ;;  %8628 = vst.msk [vmem:[%s11031_s19 + $0x30] sm:$0xf] %vm725_vm9, %v2249_v58  ;;  %v9333_v41 = vpop.f32.mrf.mxu1 }
 0x143   : > { %9789 = vmatprep.subr.mxu1 %v10405_v24  ;;  %9784 = vmatprep.subr.msk.mxu0 %vm10325_vm8, %v9966_v7  ;;  %v2360_v43 = vpop.f32.mrf.mxu0  ;;  %v2458_v49 = vadd.f32 %v9333_v41, %v9326_v40 }
 0x144   : > { %9790 = vmatpush3.msra.mxu1 %v10405_v24  ;;  %9785 = vmatpush3.msk.msra.mxu0 %vm10325_vm8, %v9966_v7  ;;  %8629 = vst.msk [vmem:[%s11031_s19 + $0x34] sm:$0xf] %vm725_vm9, %v2260_v52  ;;  %v2451_v46 = vpop.f32.mrf.mxu1 }
 0x145   : > { %9791 = vmatprep.subr.mxu1 %v10416_v27  ;;  %9786 = vmatprep.mubr.f32.mxu0 %v11053_v35  ;;  %v2452_v33 = vadd.f32 %v2451_v46, %v2360_v43 }
 0x146   : > { %9792 = vmatpush3.msra.mxu1 %v10416_v27  ;;  %9793 = vmatprep.mubr.f32.mxu1 %v10967_v31 }
 0x147   : > { %9796 = vmatprep.subr.mxu0 %v10349_v4  ;;  %9787 = vmatmul.mubr.f32.vlgmr.msra.gmra.mxu0 %v11067_v48  ;;  %v9340_v24 = vpop.f32.mrf.mxu0 }
 0x148   : > { %9794 = vmatmul.mubr.f32.vlgmr.msra.gmra.mxu1 %v10976_v26  ;;  %9797 = vmatpush3.msra.mxu0 %v10349_v4  ;;  %v2541_v28 = vadd.f32 %v9340_v24, %v2458_v49  ;;  %v9347_v61 = vpop.f32.mrf.mxu1 }
 0x149   : > { %9803 = vmatprep.subr.msk.mxu1 %vm10310_vm7, %v9966_v7  ;;  %9798 = vmatprep.subr.mxu0 %v10355_v9  ;;  %v2533_v27 = vpop.f32.mrf.mxu0 }
 0x14a   : > { %9804 = vmatpush3.msk.msra.mxu1 %vm10310_vm7, %v9966_v7  ;;  %9799 = vmatpush3.msra.mxu0 %v10355_v9  ;;  %v2624_v35 = vadd.f32 %v9347_v61, %v2541_v28  ;;  %v2534_v48 = vadd.f32 %v2533_v27, %v2452_v33  ;;  %v2615_v51 = vpop.f32.mrf.mxu1 }
 0x14b   : > { %9805 = vmatprep.subr.msk.mxu1 %vm10325_vm8, %v9966_v7  ;;  %9800 = vmatprep.mubr.f32.mxu0 %v10983_v47 }
 0x14c   : > { %9806 = vmatpush3.msk.msra.mxu1 %vm10325_vm8, %v9966_v7  ;;  %9807 = vmatprep.mubr.f32.mxu1 %v11008_v18  ;;  %v2616_v4 = vadd.f32 %v2615_v51, %v2534_v48 }
 0x14d   : > { %9810 = vmatprep.subr.mxu0 %v10364_v8  ;;  %9801 = vmatmul.mubr.f32.vlgmr.msra.gmra.mxu0 %v10997_v54  ;;  %v9354_v9 = vpop.f32.mrf.mxu0 }
 0x14e   : > { %9808 = vmatmul.mubr.f32.vlgmr.msra.gmra.mxu1 %v11018_v25  ;;  %9811 = vmatpush3.msra.mxu0 %v10364_v8  ;;  %v2707_v36 = vadd.f32 %v9354_v9, %v2624_v35  ;;  %v9361_v53 = vpop.f32.mrf.mxu1 }
 0x14f   : > { %9817 = vmatprep.subr.msk.mxu1 %vm10310_vm7, %v9966_v7  ;;  %9812 = vmatprep.subr.mxu0 %v10376_v11  ;;  %v2700_v47 = vpop.f32.mrf.mxu0 }
 0x150   : > { %9818 = vmatpush3.msk.msra.mxu1 %vm10310_vm7, %v9966_v7  ;;  %9813 = vmatpush3.msra.mxu0 %v10376_v11  ;;  %v2786_v54 = vadd.f32 %v9361_v53, %v2707_v36  ;;  %v2701_v8 = vadd.f32 %v2700_v47, %v2616_v4  ;;  %v2779_v18 = vpop.f32.mrf.mxu1 }
 0x151   : > { %9819 = vmatprep.subr.msk.mxu1 %vm10325_vm8, %v9966_v7  ;;  %9814 = vmatprep.mubr.f32.mxu0 %v10967_v31 }
 0x152   : > { %9820 = vmatpush3.msk.msra.mxu1 %vm10325_vm8, %v9966_v7  ;;  %9821 = vmatprep.mubr.f32.mxu1 %v10967_v31  ;;  %v2792_v63 = vcombine.high %v2786_v54, %v2786_v54  ;;  %8644 = vst.msk [vmem:[%s11031_s19 + $0x48] sm:$0xf] %vm725_vm9, %v2786_v54  ;;  %v2780_v11 = vadd.f32 %v2779_v18, %v2701_v8 }
 0x153   : > { %9815 = vmatmul.mubr.f32.vlgmr.msra.gmra.mxu0 %v10976_v26  ;;  %9822 = vmatmul.mubr.f32.vlgmr.msra.gmra.mxu1 %v10976_v26  ;;  %v9368_v25 = vpop.f32.mrf.mxu0 }
 0x154   : > { %8645 = vst.msk [vmem:[%s11031_s19 + $0x4c] sm:$0xf] %vm725_vm9, %v2792_v63  ;;  %v2791_v3 = vcombine.high %v2780_v11, %v2780_v11  ;;  %8642 = vst.msk [vmem:[%s11031_s19 + $0x40] sm:$0xf] %vm725_vm9, %v2780_v11  ;;  %v9375_v39 = vpop.f32.mrf.mxu1 }
 0x155   : > { %v2873_v42 = vpop.f32.mrf.mxu0  ;;  %v2971_v2 = vadd.f32 %v9375_v39, %v9368_v25 }
 0x156   : > { %8643 = vst.msk [vmem:[%s11031_s19 + $0x44] sm:$0xf] %vm725_vm9, %v2791_v3  ;;  %v2964_v7 = vpop.f32.mrf.mxu1 }
 0x157   : > { %v2965_v59 = vadd.f32 %v2964_v7, %v2873_v42 }
 0x159   : > { %v9382_v31 = vpop.f32.mrf.mxu0 }
 0x15a   : > { %v3054_v29 = vadd.f32 %v9382_v31, %v2971_v2  ;;  %v9389_v60 = vpop.f32.mrf.mxu1 }
 0x15b   : > { %v3046_v16 = vpop.f32.mrf.mxu0 }
 0x15c   : > { %v3137_v26 = vadd.f32 %v9389_v60, %v3054_v29  ;;  %v3047_v17 = vadd.f32 %v3046_v16, %v2965_v59  ;;  %v3128_v44 = vpop.f32.mrf.mxu1 }
 0x15e   : > { %v3129_v23 = vadd.f32 %v3128_v44, %v3047_v17 }
 0x15f   : > { %v9396_v45 = vpop.f32.mrf.mxu0 }
 0x160   : > { %v3220_v30 = vadd.f32 %v9396_v45, %v3137_v26  ;;  %v9403_v32 = vpop.f32.mrf.mxu1 }
 0x161   : > { %v3213_v21 = vpop.f32.mrf.mxu0 }
 0x162   : > { %v3299_v22 = vadd.f32 %v9403_v32, %v3220_v30  ;;  %v3214_v1 = vadd.f32 %v3213_v21, %v3129_v23  ;;  %v3292_v13 = vpop.f32.mrf.mxu1 }
 0x164   : > { %v3305_v62 = vcombine.high %v3299_v22, %v3299_v22  ;;  %8654 = vst.msk [vmem:[%s11031_s19 + $0x58] sm:$0xf] %vm725_vm9, %v3299_v22  ;;  %v3293_v14 = vadd.f32 %v3292_v13, %v3214_v1 }
 0x165   : > { %v9410_v34 = vpop.f32.mrf.mxu0 }
 0x166   : > { %8655 = vst.msk [vmem:[%s11031_s19 + $0x5c] sm:$0xf] %vm725_vm9, %v3305_v62  ;;  %v3304_v37 = vcombine.high %v3293_v14, %v3293_v14  ;;  %8652 = vst.msk [vmem:[%s11031_s19 + $0x50] sm:$0xf] %vm725_vm9, %v3293_v14  ;;  %v9417_v0 = vpop.f32.mrf.mxu1 }
 0x167   : > { %v3386_v38 = vpop.f32.mrf.mxu0  ;;  %v3484_v12 = vadd.f32 %v9417_v0, %v9410_v34 }
 0x168   : > { %8653 = vst.msk [vmem:[%s11031_s19 + $0x54] sm:$0xf] %vm725_vm9, %v3304_v37  ;;  %v3477_v10 = vpop.f32.mrf.mxu1 }
 0x169   : > { %v3478_v56 = vadd.f32 %v3477_v10, %v3386_v38 }
 0x16b   : > { %v9424_v55 = vpop.f32.mrf.mxu0 }
 0x16c   : > { %v3567_v19 = vadd.f32 %v9424_v55, %v3484_v12  ;;  %v9431_v5 = vpop.f32.mrf.mxu1 }
 0x16d   : > { %v3559_v20 = vpop.f32.mrf.mxu0 }
 0x16e   : > { %v3650_v15 = vadd.f32 %v9431_v5, %v3567_v19  ;;  %v3560_v6 = vadd.f32 %v3559_v20, %v3478_v56  ;;  %v3641_v57 = vpop.f32.mrf.mxu1 }
 0x170   : > { %v3642_v50 = vadd.f32 %v3641_v57, %v3560_v6 }
 0x171   : > { %v9438_v58 = vpop.f32.mrf.mxu0 }
 0x172   : > { %v3733_v40 = vadd.f32 %v9438_v58, %v3650_v15  ;;  %v9445_v52 = vpop.f32.mrf.mxu1 }
 0x173   : > { %v3726_v41 = vpop.f32.mrf.mxu0 }
 0x174   : > { %v3812_v43 = vadd.f32 %v9445_v52, %v3733_v40  ;;  %v3727_v46 = vadd.f32 %v3726_v41, %v3642_v50  ;;  %v3805_v49 = vpop.f32.mrf.mxu1 }
 0x176   : > { %v3818_v24 = vcombine.high %v3812_v43, %v3812_v43  ;;  %8664 = vst.msk [vmem:[%s11031_s19 + $0x68] sm:$0xf] %vm725_vm9, %v3812_v43  ;;  %v3806_v33 = vadd.f32 %v3805_v49, %v3727_v46 }
 0x177   : > { %v9452_v28 = vpop.f32.mrf.mxu0 }
 0x178   : > { %8665 = vst.msk [vmem:[%s11031_s19 + $0x6c] sm:$0xf] %vm725_vm9, %v3818_v24  ;;  %v3817_v61 = vcombine.high %v3806_v33, %v3806_v33  ;;  %8662 = vst.msk [vmem:[%s11031_s19 + $0x60] sm:$0xf] %vm725_vm9, %v3806_v33  ;;  %v9459_v27 = vpop.f32.mrf.mxu1 }
 0x179   : > { %v3899_v35 = vpop.f32.mrf.mxu0  ;;  %v3997_v51 = vadd.f32 %v9459_v27, %v9452_v28 }
 0x17a   : > { %8663 = vst.msk [vmem:[%s11031_s19 + $0x64] sm:$0xf] %vm725_vm9, %v3817_v61  ;;  %v3990_v48 = vpop.f32.mrf.mxu1 }
 0x17b   : > { %v3991_v9 = vadd.f32 %v3990_v48, %v3899_v35 }
 0x17d   : > { %v9466_v4 = vpop.f32.mrf.mxu0 }
 0x17e   : > { %v4080_v36 = vadd.f32 %v9466_v4, %v3997_v51  ;;  %v9473_v53 = vpop.f32.mrf.mxu1 }
 0x17f   : > { %v4072_v47 = vpop.f32.mrf.mxu0 }
 0x180   : > { %v4163_v54 = vadd.f32 %v9473_v53, %v4080_v36  ;;  %v4073_v8 = vadd.f32 %v4072_v47, %v3991_v9  ;;  %v4154_v18 = vpop.f32.mrf.mxu1 }
 0x182   : > { %v4155_v63 = vadd.f32 %v4154_v18, %v4073_v8 }
 0x183   : > { %v9480_v11 = vpop.f32.mrf.mxu0 }
 0x184   : > { %v4246_v25 = vadd.f32 %v9480_v11, %v4163_v54  ;;  %v9487_v3 = vpop.f32.mrf.mxu1 }
 0x185   : > { %v4239_v39 = vpop.f32.mrf.mxu0 }
 0x186   : > { %v4325_v42 = vadd.f32 %v9487_v3, %v4246_v25  ;;  %v4240_v7 = vadd.f32 %v4239_v39, %v4155_v63  ;;  %v4318_v2 = vpop.f32.mrf.mxu1 }
 0x188   : > { %v4331_v31 = vcombine.high %v4325_v42, %v4325_v42  ;;  %8674 = vst.msk [vmem:[%s11031_s19 + $0x78] sm:$0xf] %vm725_vm9, %v4325_v42  ;;  %v4319_v59 = vadd.f32 %v4318_v2, %v4240_v7 }
 0x189   : > { %v9494_v29 = vpop.f32.mrf.mxu0 }
 0x18a   : > { %8675 = vst.msk [vmem:[%s11031_s19 + $0x7c] sm:$0xf] %vm725_vm9, %v4331_v31  ;;  %v4330_v60 = vcombine.high %v4319_v59, %v4319_v59  ;;  %8672 = vst.msk [vmem:[%s11031_s19 + $0x70] sm:$0xf] %vm725_vm9, %v4319_v59  ;;  %v9501_v16 = vpop.f32.mrf.mxu1 }
 0x18b   : > { %v4430_v26 = vpop.f32.mrf.mxu0  ;;  %v4528_v44 = vadd.f32 %v9501_v16, %v9494_v29 }
 0x18c   : > { %8673 = vst.msk [vmem:[%s11031_s19 + $0x74] sm:$0xf] %vm725_vm9, %v4330_v60  ;;  %v4521_v17 = vpop.f32.mrf.mxu1 }
 0x18d   : > { %v4522_v45 = vadd.f32 %v4521_v17, %v4430_v26 }
 0x18f   : > { %v9508_v23 = vpop.f32.mrf.mxu0 }
 0x190   : > { %v4611_v30 = vadd.f32 %v9508_v23, %v4528_v44  ;;  %v9515_v32 = vpop.f32.mrf.mxu1 }
 0x191   : > { %v4603_v21 = vpop.f32.mrf.mxu0 }
 0x192   : > { %v4694_v22 = vadd.f32 %v9515_v32, %v4611_v30  ;;  %v4604_v1 = vadd.f32 %v4603_v21, %v4522_v45  ;;  %v4685_v13 = vpop.f32.mrf.mxu1 }
 0x194   : > { %v4686_v62 = vadd.f32 %v4685_v13, %v4604_v1 }
 0x195   : > { %v9522_v14 = vpop.f32.mrf.mxu0 }
 0x196   : > { %v4777_v34 = vadd.f32 %v9522_v14, %v4694_v22  ;;  %v9529_v37 = vpop.f32.mrf.mxu1 }
 0x197   : > { %v4770_v0 = vpop.f32.mrf.mxu0 }
 0x198   : > { %v4856_v38 = vadd.f32 %v9529_v37, %v4777_v34  ;;  %v4771_v10 = vadd.f32 %v4770_v0, %v4686_v62  ;;  %v4849_v12 = vpop.f32.mrf.mxu1 }
 0x19a   : > { %v4862_v55 = vcombine.high %v4856_v38, %v4856_v38  ;;  %8688 = vst.msk [vmem:[%s11031_s19 + $0x88] sm:$0xf] %vm725_vm9, %v4856_v38  ;;  %v4850_v56 = vadd.f32 %v4849_v12, %v4771_v10 }
 0x19b   : > { %v9536_v19 = vpop.f32.mrf.mxu0 }
 0x19c   : > { %8689 = vst.msk [vmem:[%s11031_s19 + $0x8c] sm:$0xf] %vm725_vm9, %v4862_v55  ;;  %v4861_v5 = vcombine.high %v4850_v56, %v4850_v56  ;;  %8686 = vst.msk [vmem:[%s11031_s19 + $0x80] sm:$0xf] %vm725_vm9, %v4850_v56  ;;  %v9543_v20 = vpop.f32.mrf.mxu1 }
 0x19d   : > { %v4943_v15 = vpop.f32.mrf.mxu0  ;;  %v5041_v57 = vadd.f32 %v9543_v20, %v9536_v19 }
 0x19e   : > { %8687 = vst.msk [vmem:[%s11031_s19 + $0x84] sm:$0xf] %vm725_vm9, %v4861_v5  ;;  %v5034_v6 = vpop.f32.mrf.mxu1 }
 0x19f   : > { %v5035_v58 = vadd.f32 %v5034_v6, %v4943_v15 }
 0x1a1   : > { %v9550_v50 = vpop.f32.mrf.mxu0 }
 0x1a2   : > { %v5124_v40 = vadd.f32 %v9550_v50, %v5041_v57  ;;  %v9557_v52 = vpop.f32.mrf.mxu1 }
 0x1a3   : > { %v5116_v41 = vpop.f32.mrf.mxu0 }
 0x1a4   : > { %v5207_v43 = vadd.f32 %v9557_v52, %v5124_v40  ;;  %v5117_v46 = vadd.f32 %v5116_v41, %v5035_v58  ;;  %v5198_v49 = vpop.f32.mrf.mxu1 }
 0x1a6   : > { %v5199_v24 = vadd.f32 %v5198_v49, %v5117_v46 }
 0x1a7   : > { %v9564_v33 = vpop.f32.mrf.mxu0 }
 0x1a8   : > { %v5290_v28 = vadd.f32 %v9564_v33, %v5207_v43  ;;  %v9571_v61 = vpop.f32.mrf.mxu1 }
 0x1a9   : > { %v5283_v27 = vpop.f32.mrf.mxu0 }
 0x1aa   : > { %v5369_v35 = vadd.f32 %v9571_v61, %v5290_v28  ;;  %v5284_v48 = vadd.f32 %v5283_v27, %v5199_v24  ;;  %v5362_v51 = vpop.f32.mrf.mxu1 }
 0x1ac   : > { %v5375_v4 = vcombine.high %v5369_v35, %v5369_v35  ;;  %8698 = vst.msk [vmem:[%s11031_s19 + $0x98] sm:$0xf] %vm725_vm9, %v5369_v35  ;;  %v5363_v9 = vadd.f32 %v5362_v51, %v5284_v48 }
 0x1ad   : > { %v9578_v36 = vpop.f32.mrf.mxu0 }
 0x1ae   : > { %8699 = vst.msk [vmem:[%s11031_s19 + $0x9c] sm:$0xf] %vm725_vm9, %v5375_v4  ;;  %v5374_v53 = vcombine.high %v5363_v9, %v5363_v9  ;;  %8696 = vst.msk [vmem:[%s11031_s19 + $0x90] sm:$0xf] %vm725_vm9, %v5363_v9  ;;  %v9585_v47 = vpop.f32.mrf.mxu1 }
 0x1af   : > { %v5456_v54 = vpop.f32.mrf.mxu0  ;;  %v5554_v18 = vadd.f32 %v9585_v47, %v9578_v36 }
 0x1b0   : > { %8697 = vst.msk [vmem:[%s11031_s19 + $0x94] sm:$0xf] %vm725_vm9, %v5374_v53  ;;  %v5547_v8 = vpop.f32.mrf.mxu1 }
 0x1b1   : > { %v5548_v11 = vadd.f32 %v5547_v8, %v5456_v54 }
 0x1b3   : > { %v9592_v63 = vpop.f32.mrf.mxu0 }
 0x1b4   : > { %v5637_v25 = vadd.f32 %v9592_v63, %v5554_v18  ;;  %v9599_v3 = vpop.f32.mrf.mxu1 }
 0x1b5   : > { %v5629_v39 = vpop.f32.mrf.mxu0 }
 0x1b6   : > { %v5720_v42 = vadd.f32 %v9599_v3, %v5637_v25  ;;  %v5630_v7 = vadd.f32 %v5629_v39, %v5548_v11  ;;  %v5711_v2 = vpop.f32.mrf.mxu1 }
 0x1b8   : > { %v5712_v31 = vadd.f32 %v5711_v2, %v5630_v7 }
 0x1b9   : > { %v9606_v59 = vpop.f32.mrf.mxu0 }
 0x1ba   : > { %v5803_v29 = vadd.f32 %v9606_v59, %v5720_v42  ;;  %v9613_v60 = vpop.f32.mrf.mxu1 }
 0x1bb   : > { %v5796_v16 = vpop.f32.mrf.mxu0 }
 0x1bc   : > { %v5882_v26 = vadd.f32 %v9613_v60, %v5803_v29  ;;  %v5797_v17 = vadd.f32 %v5796_v16, %v5712_v31  ;;  %v5875_v44 = vpop.f32.mrf.mxu1 }
 0x1be   : > { %v5888_v23 = vcombine.high %v5882_v26, %v5882_v26  ;;  %8708 = vst.msk [vmem:[%s11031_s19 + $0xa8] sm:$0xf] %vm725_vm9, %v5882_v26  ;;  %v5876_v45 = vadd.f32 %v5875_v44, %v5797_v17 }
 0x1bf   : > { %v9620_v30 = vpop.f32.mrf.mxu0 }
 0x1c0   : > { %8709 = vst.msk [vmem:[%s11031_s19 + $0xac] sm:$0xf] %vm725_vm9, %v5888_v23  ;;  %v5887_v32 = vcombine.high %v5876_v45, %v5876_v45  ;;  %8706 = vst.msk [vmem:[%s11031_s19 + $0xa0] sm:$0xf] %vm725_vm9, %v5876_v45  ;;  %v9627_v21 = vpop.f32.mrf.mxu1 }
 0x1c1   : > { %v5969_v22 = vpop.f32.mrf.mxu0  ;;  %v6067_v13 = vadd.f32 %v9627_v21, %v9620_v30 }
 0x1c2   : > { %8707 = vst.msk [vmem:[%s11031_s19 + $0xa4] sm:$0xf] %vm725_vm9, %v5887_v32  ;;  %v6060_v1 = vpop.f32.mrf.mxu1 }
 0x1c3   : > { %v6061_v14 = vadd.f32 %v6060_v1, %v5969_v22 }
 0x1c5   : > { %v9634_v62 = vpop.f32.mrf.mxu0 }
 0x1c6   : > { %v6150_v34 = vadd.f32 %v9634_v62, %v6067_v13  ;;  %v9641_v37 = vpop.f32.mrf.mxu1 }
 0x1c7   : > { %v6142_v0 = vpop.f32.mrf.mxu0 }
 0x1c8   : > { %v6233_v38 = vadd.f32 %v9641_v37, %v6150_v34  ;;  %v6143_v10 = vadd.f32 %v6142_v0, %v6061_v14  ;;  %v6224_v12 = vpop.f32.mrf.mxu1 }
 0x1ca   : > { %v6225_v55 = vadd.f32 %v6224_v12, %v6143_v10 }
 0x1cb   : > { %v9648_v56 = vpop.f32.mrf.mxu0 }
 0x1cc   : > { %v6316_v19 = vadd.f32 %v9648_v56, %v6233_v38  ;;  %v9655_v5 = vpop.f32.mrf.mxu1 }
 0x1cd   : > { %v6309_v20 = vpop.f32.mrf.mxu0 }
 0x1ce   : > { %v6395_v15 = vadd.f32 %v9655_v5, %v6316_v19  ;;  %v6310_v6 = vadd.f32 %v6309_v20, %v6225_v55  ;;  %v6388_v57 = vpop.f32.mrf.mxu1 }
 0x1d0   : > { %v6401_v50 = vcombine.high %v6395_v15, %v6395_v15  ;;  %8718 = vst.msk [vmem:[%s11031_s19 + $0xb8] sm:$0xf] %vm725_vm9, %v6395_v15  ;;  %v6389_v58 = vadd.f32 %v6388_v57, %v6310_v6 }
 0x1d1   : > { %v9662_v40 = vpop.f32.mrf.mxu0 }
 0x1d2   : > { %8719 = vst.msk [vmem:[%s11031_s19 + $0xbc] sm:$0xf] %vm725_vm9, %v6401_v50  ;;  %v6400_v52 = vcombine.high %v6389_v58, %v6389_v58  ;;  %8716 = vst.msk [vmem:[%s11031_s19 + $0xb0] sm:$0xf] %vm725_vm9, %v6389_v58  ;;  %v9669_v41 = vpop.f32.mrf.mxu1 }
 0x1d3   : > { %v6500_v43 = vpop.f32.mrf.mxu0  ;;  %v6598_v49 = vadd.f32 %v9669_v41, %v9662_v40 }
 0x1d4   : > { %8717 = vst.msk [vmem:[%s11031_s19 + $0xb4] sm:$0xf] %vm725_vm9, %v6400_v52  ;;  %v6591_v46 = vpop.f32.mrf.mxu1 }
 0x1d5   : > { %v6592_v33 = vadd.f32 %v6591_v46, %v6500_v43 }
 0x1d7   : > { %v9676_v24 = vpop.f32.mrf.mxu0 }
 0x1d8   : > { %v6681_v28 = vadd.f32 %v9676_v24, %v6598_v49  ;;  %v9683_v61 = vpop.f32.mrf.mxu1 }
 0x1d9   : > { %v6673_v27 = vpop.f32.mrf.mxu0 }
 0x1da   : > { %v6764_v35 = vadd.f32 %v9683_v61, %v6681_v28  ;;  %v6674_v48 = vadd.f32 %v6673_v27, %v6592_v33  ;;  %v6755_v51 = vpop.f32.mrf.mxu1 }
 0x1dc   : > { %v6756_v4 = vadd.f32 %v6755_v51, %v6674_v48 }
 0x1dd   : > { %v9690_v9 = vpop.f32.mrf.mxu0 }
 0x1de   : > { %v6847_v36 = vadd.f32 %v9690_v9, %v6764_v35  ;;  %v9697_v53 = vpop.f32.mrf.mxu1 }
 0x1df   : > { %v6840_v47 = vpop.f32.mrf.mxu0 }
 0x1e0   : > { %v6926_v54 = vadd.f32 %v9697_v53, %v6847_v36  ;;  %v6841_v8 = vadd.f32 %v6840_v47, %v6756_v4  ;;  %v6919_v18 = vpop.f32.mrf.mxu1 }
 0x1e2   : > { %v6932_v63 = vcombine.high %v6926_v54, %v6926_v54  ;;  %8732 = vst.msk [vmem:[%s11031_s19 + $0xc8] sm:$0xf] %vm725_vm9, %v6926_v54  ;;  %v6920_v11 = vadd.f32 %v6919_v18, %v6841_v8 }
 0x1e3   : > { %v9704_v25 = vpop.f32.mrf.mxu0 }
 0x1e4   : > { %8733 = vst.msk [vmem:[%s11031_s19 + $0xcc] sm:$0xf] %vm725_vm9, %v6932_v63  ;;  %v6931_v3 = vcombine.high %v6920_v11, %v6920_v11  ;;  %8730 = vst.msk [vmem:[%s11031_s19 + $0xc0] sm:$0xf] %vm725_vm9, %v6920_v11  ;;  %v9711_v39 = vpop.f32.mrf.mxu1 }
 0x1e5   : > { %v7013_v42 = vpop.f32.mrf.mxu0  ;;  %v7111_v2 = vadd.f32 %v9711_v39, %v9704_v25 }
 0x1e6   : > { %8731 = vst.msk [vmem:[%s11031_s19 + $0xc4] sm:$0xf] %vm725_vm9, %v6931_v3  ;;  %v7104_v7 = vpop.f32.mrf.mxu1 }
 0x1e7   : > { %v7105_v59 = vadd.f32 %v7104_v7, %v7013_v42 }
 0x1e9   : > { %v9718_v31 = vpop.f32.mrf.mxu0 }
 0x1ea   : > { %v7194_v29 = vadd.f32 %v9718_v31, %v7111_v2  ;;  %v9725_v60 = vpop.f32.mrf.mxu1 }
 0x1eb   : > { %v7186_v16 = vpop.f32.mrf.mxu0 }
 0x1ec   : > { %v7277_v26 = vadd.f32 %v9725_v60, %v7194_v29  ;;  %v7187_v17 = vadd.f32 %v7186_v16, %v7105_v59  ;;  %v7268_v44 = vpop.f32.mrf.mxu1 }
 0x1ee   : > { %v7269_v23 = vadd.f32 %v7268_v44, %v7187_v17 }
 0x1ef   : > { %v9732_v45 = vpop.f32.mrf.mxu0 }
 0x1f0   : > { %v7360_v30 = vadd.f32 %v9732_v45, %v7277_v26  ;;  %v9739_v32 = vpop.f32.mrf.mxu1 }
 0x1f1   : > { %v7353_v21 = vpop.f32.mrf.mxu0 }
 0x1f2   : > { %v7439_v22 = vadd.f32 %v9739_v32, %v7360_v30  ;;  %v7354_v1 = vadd.f32 %v7353_v21, %v7269_v23  ;;  %v7432_v13 = vpop.f32.mrf.mxu1 }
 0x1f4   : > { %v7445_v62 = vcombine.high %v7439_v22, %v7439_v22  ;;  %8742 = vst.msk [vmem:[%s11031_s19 + $0xd8] sm:$0xf] %vm725_vm9, %v7439_v22  ;;  %v7433_v14 = vadd.f32 %v7432_v13, %v7354_v1 }
 0x1f5   : > { %v9746_v34 = vpop.f32.mrf.mxu0 }
 0x1f6   : > { %8743 = vst.msk [vmem:[%s11031_s19 + $0xdc] sm:$0xf] %vm725_vm9, %v7445_v62  ;;  %v7444_v37 = vcombine.high %v7433_v14, %v7433_v14  ;;  %8740 = vst.msk [vmem:[%s11031_s19 + $0xd0] sm:$0xf] %vm725_vm9, %v7433_v14  ;;  %v9753_v0 = vpop.f32.mrf.mxu1 }
 0x1f7   : > { %v7526_v38 = vpop.f32.mrf.mxu0  ;;  %v7624_v12 = vadd.f32 %v9753_v0, %v9746_v34 }
 0x1f8   : > { %8741 = vst.msk [vmem:[%s11031_s19 + $0xd4] sm:$0xf] %vm725_vm9, %v7444_v37  ;;  %v7617_v10 = vpop.f32.mrf.mxu1 }
 0x1f9   : > { %v7618_v56 = vadd.f32 %v7617_v10, %v7526_v38 }
 0x1fb   : > { %v9760_v55 = vpop.f32.mrf.mxu0 }
 0x1fc   : > { %v7707_v19 = vadd.f32 %v9760_v55, %v7624_v12  ;;  %v9767_v5 = vpop.f32.mrf.mxu1 }
 0x1fd   : > { %v7699_v20 = vpop.f32.mrf.mxu0 }
 0x1fe   : > { %v7790_v15 = vadd.f32 %v9767_v5, %v7707_v19  ;;  %v7700_v6 = vadd.f32 %v7699_v20, %v7618_v56  ;;  %v7781_v57 = vpop.f32.mrf.mxu1 }
 0x200   : > { %v7782_v50 = vadd.f32 %v7781_v57, %v7700_v6 }
 0x201   : > { %v9774_v58 = vpop.f32.mrf.mxu0 }
 0x202   : > { %v7873_v40 = vadd.f32 %v9774_v58, %v7790_v15  ;;  %v9781_v52 = vpop.f32.mrf.mxu1 }
 0x203   : > { %v7866_v41 = vpop.f32.mrf.mxu0 }
 0x204   : > { %v7952_v43 = vadd.f32 %v9781_v52, %v7873_v40  ;;  %v7867_v46 = vadd.f32 %v7866_v41, %v7782_v50  ;;  %v7945_v49 = vpop.f32.mrf.mxu1 }
 0x206   : > { %v7958_v24 = vcombine.high %v7952_v43, %v7952_v43  ;;  %8752 = vst.msk [vmem:[%s11031_s19 + $0xe8] sm:$0xf] %vm725_vm9, %v7952_v43  ;;  %v7946_v33 = vadd.f32 %v7945_v49, %v7867_v46 }
 0x207   : > { %v9788_v28 = vpop.f32.mrf.mxu0 }
 0x208   : > { %8753 = vst.msk [vmem:[%s11031_s19 + $0xec] sm:$0xf] %vm725_vm9, %v7958_v24  ;;  %v7957_v61 = vcombine.high %v7946_v33, %v7946_v33  ;;  %8750 = vst.msk [vmem:[%s11031_s19 + $0xe0] sm:$0xf] %vm725_vm9, %v7946_v33  ;;  %v9795_v27 = vpop.f32.mrf.mxu1 }
 0x209   : > { %v8039_v35 = vpop.f32.mrf.mxu0  ;;  %v8137_v51 = vadd.f32 %v9795_v27, %v9788_v28 }
 0x20a   : > { %8751 = vst.msk [vmem:[%s11031_s19 + $0xe4] sm:$0xf] %vm725_vm9, %v7957_v61  ;;  %v8130_v48 = vpop.f32.mrf.mxu1 }
 0x20b   : > { %v8131_v9 = vadd.f32 %v8130_v48, %v8039_v35 }
 0x20d   : > { %v9802_v4 = vpop.f32.mrf.mxu0 }
 0x20e   : > { %v8220_v36 = vadd.f32 %v9802_v4, %v8137_v51  ;;  %v9809_v53 = vpop.f32.mrf.mxu1 }
 0x20f   : > { %v8212_v47 = vpop.f32.mrf.mxu0 }
 0x210   : > { %v8303_v54 = vadd.f32 %v9809_v53, %v8220_v36  ;;  %v8213_v8 = vadd.f32 %v8212_v47, %v8131_v9  ;;  %v8294_v18 = vpop.f32.mrf.mxu1 }
 0x212   : > { %v8295_v63 = vadd.f32 %v8294_v18, %v8213_v8 }
 0x213   : > { %v9816_v11 = vpop.f32.mrf.mxu0  ;;  %v9823_v25 = vpop.f32.mrf.mxu1 }
 0x214   : > { %v8386_v3 = vadd.f32 %v9816_v11, %v8303_v54 }
 0x215   : > { %v8379_v39 = vpop.f32.mrf.mxu0  ;;  %v8458_v2 = vpop.f32.mrf.mxu1 }
 0x216   : > { %v8465_v42 = vadd.f32 %v9823_v25, %v8386_v3  ;;  %v8380_v7 = vadd.f32 %v8379_v39, %v8295_v63 }
 0x218   : > { %v8471_v31 = vcombine.high %v8465_v42, %v8465_v42  ;;  %8762 = vst.msk [vmem:[%s11031_s19 + $0xf8] sm:$0xf] %vm725_vm9, %v8465_v42  ;;  %v8459_v59 = vadd.f32 %v8458_v2, %v8380_v7 }
 0x21a   : > { %8763 = vst.msk [vmem:[%s11031_s19 + $0xfc] sm:$0xf] %vm725_vm9, %v8471_v31  ;;  %v8470_v29 = vcombine.high %v8459_v59, %v8459_v59  ;;  %8760 = vst.msk [vmem:[%s11031_s19 + $0xf0] sm:$0xf] %vm725_vm9, %v8459_v59 }
 0x21c   : > { %8761 = vst.msk [vmem:[%s11031_s19 + $0xf4] sm:$0xf] %vm725_vm9, %v8470_v29 }
 0x21d PF: > { %s14_s11 = sadd.s32 1, %s9961_s11   ;;  %s11460_s6 = smov %s9945_s7 }
 0x21e   : > { %p11_p8 = scmp.ge.s32.totalorder %s14_s11, 4   ;;  %s11461_s7 = smov %s9949_s8 }
 0x21f   : > { %s11462_s8 = smov %s10027_s18  ;;  %s11463_s9 = smov %s9957_s10 }
 0x220   : > { %s11464_s10 = smov %s11466_s13  ;;  %13 = sbr.rel (!%p11_p8) target bundleno = 4 (0x4), region = 94 }
 0x225   :  { %8509 = vsyncpa [#allocation3], 1 }
 0x226   :  { %8511 = vsyncpa [#allocation3 + $0x1], 1 }

</bundles_post_ra>
